<compile_context>
chip_gen: v6e
topology: v6e:2x2x1
jax: 0.10.0
libtpu: 0.0.40
codegen_flags: <defaults>
</compile_context>

<pallas_src>
import jax
import jax.numpy as jnp
from jax.experimental import pallas as pl
from jax.experimental.pallas import tpu as pltpu


def retrieval_kernel(x_ref, w1_ref, b1_ref, wfc_ref, bfc_ref, out_ref, acc_ref):
    k = pl.program_id(1)

    @pl.when(k == 0)
    def _():
        acc_ref[...] = jnp.zeros_like(acc_ref)

    bm, hw, c_in = x_ref.shape

    # "backbone": 1x1 conv == pointwise matmul over all BM*HW positions (bf16 MXU
    # operands, f32 accumulation), + bias + ReLU in f32.
    x2d = x_ref[...].reshape(bm * hw, c_in)                               # bf16
    feats = jnp.dot(x2d, w1_ref[...],
                    preferred_element_type=jnp.float32)                   # (BM*HW, Fc) f32
    feats = jnp.maximum(feats + b1_ref[...], 0.0)

    # default pooling: global average over spatial positions, on the VPU.
    pooled = jnp.sum(feats.reshape(bm, hw, -1), axis=1) * (1.0 / hw)      # (BM, Fc) f32

    # X_sep = fc(standardize(pooled)); standardize = Identity.  Accumulate the
    # partial projection for this F chunk in f32.
    acc_ref[...] += jnp.dot(pooled.astype(wfc_ref.dtype), wfc_ref[...],
                            preferred_element_type=jnp.float32)           # (BM, E_pad)

    @pl.when(k == pl.num_programs(1) - 1)
    def _():
        x_sep = acc_ref[...] + bfc_ref[...]
        # F.normalize(X_sep, p=2, dim=-1): x / max(||x||, 1e-12)
        #   == x * rsqrt(max(sum(x^2), 1e-24)).
        # Padded E lanes of x_sep are exactly zero, so they do not perturb the norm.
        # (sumsq can underflow to 0 for ||x|| < ~1e-19; result stays finite.)
        sumsq = jnp.sum(x_sep * x_sep, axis=-1, keepdims=True)
        out_ref[...] = (x_sep * jax.lax.rsqrt(jnp.maximum(sumsq, 1e-24))
                        ).astype(out_ref.dtype)


def _round_up(a, b):
    return ((a + b - 1) // b) * b


def retrieval_net_forward(x_nchw, params, *, block_b=128, f_chunk=512):
    """x_nchw: (B, C_in, H, W) float32.  Returns L2-normalized embedding (B, E)."""
    w1, b1, wfc, bfc = (params[k] for k in ("w1", "b1", "wfc", "bfc"))
    B, C_in, H, W = x_nchw.shape
    HW = H * W
    F_out = w1.shape[1]
    E = wfc.shape[1]

    # Lane-pad feature / embed dims to multiples of 128 (zero pads -> exact results),
    # then pad F further so it tiles evenly into F chunks.
    F_pad = _round_up(F_out, 128)
    E_pad = _round_up(E, 128)
    Fc = min(f_chunk, F_pad)
    F_pad = _round_up(F_pad, Fc)
    n_f = F_pad // Fc

    # Batch tiling: large BM for MXU-shaped projection / whole-vreg output slabs,
    # clamped down for tiny batches (toy shapes).
    BM = min(block_b, _round_up(B, 8))
    B_pad = _round_up(B, BM)
    n_b = B_pad // BM

    # NCHW -> (B, HW, C_in) channels-last, cast to bf16 MXU operand.
    # TODO(synk): a real backbone would hand channels-last features directly and with
    # B % BM == 0 the pad copy disappears too; both copies are pure HBM overhead here.
    x = jnp.transpose(x_nchw, (0, 2, 3, 1)).reshape(B, HW, C_in).astype(jnp.bfloat16)
    if B_pad != B:
        x = jnp.pad(x, ((0, B_pad - B), (0, 0), (0, 0)))

    # Zero-padded weights (bf16 MXU operands) and biases (f32 - elementwise math is f32).
    w1p = jnp.zeros((C_in, F_pad), jnp.bfloat16).at[:, :F_out].set(w1.astype(jnp.bfloat16))
    b1p = jnp.zeros((1, F_pad), jnp.float32).at[:, :F_out].set(b1)
    wfcp = jnp.zeros((F_pad, E_pad), jnp.bfloat16).at[:F_out, :E].set(wfc.astype(jnp.bfloat16))
    bfcp = jnp.zeros((1, E_pad), jnp.float32).at[:, :E].set(bfc)

    grid_spec = pltpu.PrefetchScalarGridSpec(
        num_scalar_prefetch=0,
        grid=(n_b, n_f),
        in_specs=[
            pl.BlockSpec((BM, HW, C_in), lambda i, k: (i, 0, 0)),   # x (constant over k)
            pl.BlockSpec((C_in, Fc), lambda i, k: (0, k)),          # backbone 1x1 conv w
            pl.BlockSpec((1, Fc), lambda i, k: (0, k)),             # backbone bias
            pl.BlockSpec((Fc, E_pad), lambda i, k: (k, 0)),         # fc weight
            pl.BlockSpec((1, E_pad), lambda i, k: (0, 0)),          # fc bias (constant)
        ],
        out_specs=pl.BlockSpec((BM, E_pad), lambda i, k: (i, 0)),
        scratch_shapes=[pltpu.VMEM((BM, E_pad), jnp.float32)],      # x_sep accumulator
    )

    out = pl.pallas_call(
        retrieval_kernel,
        out_shape=jax.ShapeDtypeStruct((B_pad, E_pad), jnp.float32),
        grid_spec=grid_spec,
        compiler_params=pltpu.CompilerParams(
            dimension_semantics=("parallel", "arbitrary"),
            # Raise the scoped VMEM budget so production BM / F-chunk sizes aren't
            # capped by the 16/32 MiB defaults; actual usage here is tiny.
            vmem_limit_bytes=64 * 1024 * 1024),
    )(x, w1p, b1p, wfcp, bfcp)

    # Strip batch / lane padding.  NOTE: padded batch rows are NOT zero (ReLU(b1)
    # propagates) - never read rows [B:B_pad] of the raw output buffer.
    return out[:B, :E]


def init_params(key, c_in, out_features, embed_dim):
    ks = jax.random.split(key, 4)
    scale1 = 1.0 / jnp.sqrt(c_in)
    scale2 = 1.0 / jnp.sqrt(out_features)
    return {
        "w1":  jax.random.normal(ks[0], (c_in, out_features), jnp.float32) * scale1,
        "b1":  jax.random.normal(ks[1], (1, out_features), jnp.float32) * 0.01,
        "wfc": jax.random.normal(ks[2], (out_features, embed_dim), jnp.float32) * scale2,
        "bfc": jax.random.normal(ks[3], (1, embed_dim), jnp.float32) * 0.01,
    }


def reference_forward(x_nchw, params):
    """Pure-JAX f32 reference of the same forward pass (for a correctness check)."""
    B, C_in, H, W = x_nchw.shape
    x = jnp.transpose(x_nchw, (0, 2, 3, 1)).reshape(B, H * W, C_in)
    feats = jnp.maximum(jnp.einsum("bsc,cf->bsf", x, params["w1"]) + params["b1"], 0.0)
    pooled = jnp.mean(feats, axis=1)                                  # (B, F)
    x_sep = pooled @ params["wfc"] + params["bfc"]
    norm = jnp.sqrt(jnp.sum(x_sep * x_sep, axis=-1, keepdims=True))
    return x_sep / jnp.maximum(norm, 1e-12)


if __name__ == "__main__":
    B, C_in, H, W = 2, 4, 16, 16
    OUT_FEATURES, EMBED_DIM = 32, 32

    key = jax.random.PRNGKey(0)
    k_x, k_p = jax.random.split(key)
    x = jax.random.normal(k_x, (B, C_in, H, W), jnp.float32)
    params = init_params(k_p, C_in, OUT_FEATURES, EMBED_DIM)

    out = retrieval_net_forward(x, params)
    out = jax.block_until_ready(out)

    ref = reference_forward(x, params)
    assert out.shape == (B, EMBED_DIM)
    # bf16 MXU operands (f32 accumulation / normalize) => relaxed tolerance vs the
    # pure-f32 reference; observed error is ~3e-3, bound left with headroom.
    max_err = float(jnp.max(jnp.abs(out - ref)))
    assert max_err < 2e-2, f"mismatch vs JAX reference (max abs err {max_err})"

    print("KERNEL_OK")
</pallas_src>

<mosaic_0001>
module attributes {stable_mosaic.version = 11 : i64} {
  func.func @retrieval_kernel(%arg0: i32, %arg1: i32, %arg2: memref<8x256x4xbf16, #tpu.memory_space<vmem>>, %arg3: memref<4x128xbf16, #tpu.memory_space<vmem>>, %arg4: memref<1x128xf32, #tpu.memory_space<vmem>>, %arg5: memref<128x128xbf16, #tpu.memory_space<vmem>>, %arg6: memref<1x128xf32, #tpu.memory_space<vmem>>, %arg7: memref<8x128xf32, #tpu.memory_space<vmem>>, %arg8: memref<8x128xf32, #tpu.memory_space<vmem>>) attributes {dimension_semantics = [#tpu.dimension_semantics<parallel>, #tpu.dimension_semantics<arbitrary>], iteration_bounds = array<i64: 1, 1>, scalar_prefetch = 0 : i64, scratch_operands = 1 : i64, tpu.core_type = #tpu.core_type<tc>, window_params = [{transform_indices = @transform_0, window_bounds = array<i64: 8, 256, 4>}, {transform_indices = @transform_1, window_bounds = array<i64: 4, 128>}, {transform_indices = @transform_2, window_bounds = array<i64: 1, 128>}, {transform_indices = @transform_3, window_bounds = array<i64: 128, 128>}, {pipeline_mode = #tpu.pipeline_mode<synchronous>, transform_indices = @transform_4, window_bounds = array<i64: 1, 128>}, {transform_indices = @transform_5, window_bounds = array<i64: 8, 128>}]} {
    %c0_i32 = arith.constant 0 : i32
    %0 = arith.cmpi eq, %arg1, %c0_i32 : i32
    %1 = arith.extui %0 : i1 to i32
    %c0_i32_0 = arith.constant 0 : i32
    %2 = arith.cmpi ne, %1, %c0_i32_0 : i32
    scf.if %2 {
      %cst_19 = arith.constant 0.000000e+00 : f32
      %25 = vector.broadcast %cst_19 : f32 to vector<8x128xf32>
      %c0_20 = arith.constant 0 : index
      %c0_21 = arith.constant 0 : index
      %26 = vector.load %arg8[%c0_20, %c0_21] : memref<8x128xf32, #tpu.memory_space<vmem>>, vector<8x128xf32>
      tpu.vector_store %arg8[%c0_20, %c0_21], %25 {strides = array<i32>} : memref<8x128xf32, #tpu.memory_space<vmem>>, vector<8x128xf32>,
    } else {
    }
    %c0 = arith.constant 0 : index
    %c0_1 = arith.constant 0 : index
    %c0_2 = arith.constant 0 : index
    %3 = vector.load %arg2[%c0, %c0_1, %c0_2] : memref<8x256x4xbf16, #tpu.memory_space<vmem>>, vector<8x256x4xbf16>
    %4 = vector.shape_cast %3 : vector<8x256x4xbf16> to vector<2048x4xbf16>
    %c0_3 = arith.constant 0 : index
    %c0_4 = arith.constant 0 : index
    %5 = vector.load %arg3[%c0_3, %c0_4] : memref<4x128xbf16, #tpu.memory_space<vmem>>, vector<4x128xbf16>
    %cst = arith.constant dense<0.000000e+00> : vector<2048x128xf32>
    %6 = tpu.matmul %4, %5, %cst {dimension_numbers = #tpu.dot_dimension_numbers<[1], [0], [0], [1], [0, 0, 1, 1], [], []>} : vector<2048x4xbf16>, vector<4x128xbf16>, vector<2048x128xf32> -> vector<2048x128xf32>
    %c0_5 = arith.constant 0 : index
    %c0_6 = arith.constant 0 : index
    %7 = vector.load %arg4[%c0_5, %c0_6] : memref<1x128xf32, #tpu.memory_space<vmem>>, vector<1x128xf32>
    %8 = vector.broadcast %7 : vector<1x128xf32> to vector<2048x128xf32>
    %9 = arith.addf %6, %8 : vector<2048x128xf32>
    %cst_7 = arith.constant 0.000000e+00 : f32
    %10 = vector.broadcast %cst_7 : f32 to vector<2048x128xf32>
    %11 = arith.maximumf %9, %10 : vector<2048x128xf32>
    %12 = vector.shape_cast %11 : vector<2048x128xf32> to vector<8x256x128xf32>
    %cst_8 = arith.constant dense<0.000000e+00> : vector<8x128xf32>
    %13 = vector.multi_reduction <add>, %12, %cst_8 [1] : vector<8x256x128xf32> to vector<8x128xf32>
    %cst_9 = arith.constant 3.906250e-03 : f32
    %14 = vector.broadcast %cst_9 : f32 to vector<8x128xf32>
    %15 = arith.mulf %13, %14 : vector<8x128xf32>
    %c0_10 = arith.constant 0 : index
    %c0_11 = arith.constant 0 : index
    %16 = vector.load %arg8[%c0_10, %c0_11] : memref<8x128xf32, #tpu.memory_space<vmem>>, vector<8x128xf32>
    %17 = arith.truncf %15 : vector<8x128xf32> to vector<8x128xbf16>
    %c0_12 = arith.constant 0 : index
    %c0_13 = arith.constant 0 : index
    %18 = vector.load %arg5[%c0_12, %c0_13] : memref<128x128xbf16, #tpu.memory_space<vmem>>, vector<128x128xbf16>
    %cst_14 = arith.constant dense<0.000000e+00> : vector<8x128xf32>
    %19 = tpu.matmul %17, %18, %cst_14 {dimension_numbers = #tpu.dot_dimension_numbers<[1], [0], [0], [1], [0, 0, 1, 1], [], []>} : vector<8x128xbf16>, vector<128x128xbf16>, vector<8x128xf32> -> vector<8x128xf32>
    %20 = arith.addf %16, %19 : vector<8x128xf32>
    %c0_15 = arith.constant 0 : index
    %c0_16 = arith.constant 0 : index
    %21 = vector.load %arg8[%c0_15, %c0_16] : memref<8x128xf32, #tpu.memory_space<vmem>>, vector<8x128xf32>
    tpu.vector_store %arg8[%c0_15, %c0_16], %20 {strides = array<i32>} : memref<8x128xf32, #tpu.memory_space<vmem>>, vector<8x128xf32>,
    %c0_i32_17 = arith.constant 0 : i32
    %22 = arith.cmpi eq, %arg1, %c0_i32_17 : i32
    %23 = arith.extui %22 : i1 to i32
    %c0_i32_18 = arith.constant 0 : i32
    %24 = arith.cmpi ne, %23, %c0_i32_18 : i32
    scf.if %24 {
      %c0_19 = arith.constant 0 : index
      %c0_20 = arith.constant 0 : index
      %25 = vector.load %arg8[%c0_19, %c0_20] : memref<8x128xf32, #tpu.memory_space<vmem>>, vector<8x128xf32>
      %c0_21 = arith.constant 0 : index
      %c0_22 = arith.constant 0 : index
      %26 = vector.load %arg6[%c0_21, %c0_22] : memref<1x128xf32, #tpu.memory_space<vmem>>, vector<1x128xf32>
      %27 = vector.broadcast %26 : vector<1x128xf32> to vector<8x128xf32>
      %28 = arith.addf %25, %27 : vector<8x128xf32>
      %29 = arith.mulf %28, %28 : vector<8x128xf32>
      %cst_23 = arith.constant dense<0.000000e+00> : vector<8xf32>
      %30 = vector.multi_reduction <add>, %29, %cst_23 [1] : vector<8x128xf32> to vector<8xf32>
      %31 = vector.shape_cast %30 : vector<8xf32> to vector<8x1xf32>
      %cst_24 = arith.constant 1.000000e-24 : f32
      %32 = vector.broadcast %cst_24 : f32 to vector<8x1xf32>
      %33 = arith.maximumf %31, %32 : vector<8x1xf32>
      %34 = math.rsqrt %33 : vector<8x1xf32>
      %35 = vector.broadcast %34 : vector<8x1xf32> to vector<8x128xf32>
      %36 = arith.mulf %28, %35 : vector<8x128xf32>
      %c0_25 = arith.constant 0 : index
      %c0_26 = arith.constant 0 : index
      %37 = vector.load %arg7[%c0_25, %c0_26] : memref<8x128xf32, #tpu.memory_space<vmem>>, vector<8x128xf32>
      tpu.vector_store %arg7[%c0_25, %c0_26], %36 {strides = array<i32>} : memref<8x128xf32, #tpu.memory_space<vmem>>, vector<8x128xf32>,
    } else {
    }
    return
  }
  func.func @transform_0(%arg0: i32, %arg1: i32) -> (i32, i32, i32) {
    %c0_i32 = arith.constant 0 : i32
    %c0_i32_0 = arith.constant 0 : i32
    %c0_i32_1 = arith.constant 0 : i32
    return %arg0, %c0_i32, %c0_i32_0 : i32, i32, i32
  }
  func.func @transform_1(%arg0: i32, %arg1: i32) -> (i32, i32) {
    %c0_i32 = arith.constant 0 : i32
    %c0_i32_0 = arith.constant 0 : i32
    return %c0_i32, %arg1 : i32, i32
  }
  func.func @transform_2(%arg0: i32, %arg1: i32) -> (i32, i32) {
    %c0_i32 = arith.constant 0 : i32
    %c0_i32_0 = arith.constant 0 : i32
    return %c0_i32, %arg1 : i32, i32
  }
  func.func @transform_3(%arg0: i32, %arg1: i32) -> (i32, i32) {
    %c0_i32 = arith.constant 0 : i32
    %c0_i32_0 = arith.constant 0 : i32
    return %arg1, %c0_i32 : i32, i32
  }
  func.func @transform_4(%arg0: i32, %arg1: i32) -> (i32, i32) {
    %c0_i32 = arith.constant 0 : i32
    %c0_i32_0 = arith.constant 0 : i32
    %c0_i32_1 = arith.constant 0 : i32
    return %c0_i32, %c0_i32_0 : i32, i32
  }
  func.func @transform_5(%arg0: i32, %arg1: i32) -> (i32, i32) {
    %c0_i32 = arith.constant 0 : i32
    %c0_i32_0 = arith.constant 0 : i32
    return %arg0, %c0_i32 : i32, i32
  }
}

</mosaic_0001>

<bundles_post_ra>
// kernel: tpu_custom_call.1
= control target key start
LH: loop header
LB: loop body
LE: loop exit
PB: predicated region body
PF: predicated region fallthrough
CT: control target
= control target key end

     0   :  { %vm1316_vm0 = vcmask 1041408   ;;  %vm931_vm1 = vcmask 31744   ;;  %s4932_s0 = inlined_call_operand.vmem [shape: bf16[8,256,4], index: 0, kind: input, shape index: {}]   ;;  %s4933_s1 = inlined_call_operand.vmem [shape: bf16[4,128], index: 1, kind: input, shape index: {}]   ;;  %s4934_s2 = inlined_call_operand.vmem [shape: f32[1,128], index: 2, kind: input, shape index: {}]   ;;  %s4935_s3 = inlined_call_operand.vmem [shape: bf16[128,128], index: 3, kind: input, shape index: {}]   ;;  %s4936_s4 = inlined_call_operand.vmem [shape: f32[1,128], index: 4, kind: input, shape index: {}]   ;;  %s4937_s5 = inlined_call_operand.hbm [shape: f32[8,128], index: 5, kind: output, shape index: {}]  }
   0x1   :  { %v283_v0 = vld [vmem:[%s4933_s1] sm:$0x3]  ;;  %v3807_v3 = vld [vmem:[%s4932_s0 + $0x8] sm:$0xff]   ;;  %v3808_v4 = vld [vmem:[%s4932_s0 + $0x10] sm:$0xff]  }
   0x2   :  { %v3806_v1 = vld [vmem:[%s4932_s0] sm:$0xff]   ;;  %3801 = vmatprep.subr.msk.bf16.mxu0 %vm1316_vm0, %v283_v0  ;;  %v1318_v2 = vsel %vm1316_vm0, %v283_v0, 0  ;;  %3802 = vmatprep.subr.msk.bf16.mxu1 %vm1316_vm0, %v283_v0  ;;  %v3809_v5 = vld [vmem:[%s4932_s0 + $0x18] sm:$0xff]   ;;  %v3811_v7 = vld [vmem:[%s4932_s0 + $0x28] sm:$0xff]  }
   0x3   :  { %3522 = vmatpush3.bf16.msra.mxu0 %v1318_v2  ;;  %3523 = vmatprep.mubr.msk.bf16.mxu0 %vm931_vm1, %v3806_v1  ;;  %v3810_v6 = vld [vmem:[%s4932_s0 + $0x20] sm:$0xff]   ;;  %v3812_v8 = vld [vmem:[%s4932_s0 + $0x30] sm:$0xff]   ;;  %v3823_v10 = vld [vmem:[%s4932_s0 + $0x218] sm:$0xff]  }
   0x4   :  { %3800 = vmatpush3.bf16.msra.mxu1 %v1318_v2  ;;  %v3822_v9 = vld [vmem:[%s4932_s0 + $0x210] sm:$0xff]   ;;  %v3826_v11 = vld [vmem:[%s4932_s0 + $0x220] sm:$0xff]   ;;  %v3813_v12 = vld [vmem:[%s4932_s0 + $0x38] sm:$0xff]  }
   0x5   :  { %3655 = vmatprep.mubr.msk.bf16.mxu1 %vm931_vm1, %v3822_v9  ;;  %v3827_v13 = vld [vmem:[%s4932_s0 + $0x228] sm:$0xff]   ;;  %v3830_v14 = vld [vmem:[%s4932_s0 + $0x230] sm:$0xff]   ;;  %v3814_v15 = vld [vmem:[%s4932_s0 + $0x40] sm:$0xff]  }
   0x6   :  { %3524 = vmatmul.mubr.msk.bf16.vlgmr.msra.gmra.mxu0 %vm931_vm1, %v3807_v3  ;;  %v3815_v16 = vld [vmem:[%s4932_s0 + $0x48] sm:$0xff]   ;;  %v3831_v17 = vld [vmem:[%s4932_s0 + $0x238] sm:$0xff]   ;;  %v3834_v18 = vld [vmem:[%s4932_s0 + $0x240] sm:$0xff]  }
   0x7   :  { %3527 = vmatprep.mubr.msk.bf16.mxu0 %vm931_vm1, %v3808_v4  ;;  %3656 = vmatmul.mubr.msk.bf16.vlgmr.msra.gmra.mxu1 %vm931_vm1, %v3823_v10  ;;  %v3816_v19 = vld [vmem:[%s4932_s0 + $0x50] sm:$0xff]   ;;  %v3817_v20 = vld [vmem:[%s4932_s0 + $0x58] sm:$0xff]   ;;  %v3835_v21 = vld [vmem:[%s4932_s0 + $0x248] sm:$0xff]  }
   0x8   :  { %3659 = vmatprep.mubr.msk.bf16.mxu1 %vm931_vm1, %v3826_v11  ;;  %v3838_v22 = vld [vmem:[%s4932_s0 + $0x250] sm:$0xff]   ;;  %v3818_v23 = vld [vmem:[%s4932_s0 + $0x60] sm:$0xff]   ;;  %v3819_v24 = vld [vmem:[%s4932_s0 + $0x68] sm:$0xff]  }
   0x9   :  { %v3839_v25 = vld [vmem:[%s4932_s0 + $0x258] sm:$0xff]   ;;  %v3842_v26 = vld [vmem:[%s4932_s0 + $0x260] sm:$0xff]   ;;  %v3820_v27 = vld [vmem:[%s4932_s0 + $0x70] sm:$0xff]  }
   0xa   :  { %v3821_v28 = vld [vmem:[%s4932_s0 + $0x78] sm:$0xff]   ;;  %v3843_v29 = vld [vmem:[%s4932_s0 + $0x268] sm:$0xff]   ;;  %v3846_v30 = vld [vmem:[%s4932_s0 + $0x270] sm:$0xff]  }
   0xb   :  { %v3824_v31 = vld [vmem:[%s4932_s0 + $0x80] sm:$0xff]   ;;  %v3825_v32 = vld [vmem:[%s4932_s0 + $0x88] sm:$0xff]   ;;  %v3847_v33 = vld [vmem:[%s4932_s0 + $0x278] sm:$0xff]  }
   0xc   :  { %v3850_v34 = vld [vmem:[%s4932_s0 + $0x280] sm:$0xff]   ;;  %v3828_v35 = vld [vmem:[%s4932_s0 + $0x90] sm:$0xff]   ;;  %v3829_v36 = vld [vmem:[%s4932_s0 + $0x98] sm:$0xff]  }
   0xd   :  { %v3851_v37 = vld [vmem:[%s4932_s0 + $0x288] sm:$0xff]   ;;  %v3854_v38 = vld [vmem:[%s4932_s0 + $0x290] sm:$0xff]   ;;  %v3832_v39 = vld [vmem:[%s4932_s0 + $0xa0] sm:$0xff]  }
   0xe   :  { %3528 = vmatmul.mubr.msk.bf16.gmra.mxu0 %vm931_vm1, %v3809_v5  ;;  %v3833_v40 = vld [vmem:[%s4932_s0 + $0xa8] sm:$0xff]   ;;  %v3855_v41 = vld [vmem:[%s4932_s0 + $0x298] sm:$0xff]   ;;  %v3858_v42 = vld [vmem:[%s4932_s0 + $0x2a0] sm:$0xff]  }
   0xf   :  { %3531 = vmatprep.mubr.msk.bf16.mxu0 %vm931_vm1, %v3810_v6  ;;  %3660 = vmatmul.mubr.msk.bf16.gmra.mxu1 %vm931_vm1, %v3827_v13  ;;  %v3836_v43 = vld [vmem:[%s4932_s0 + $0xb0] sm:$0xff]   ;;  %v3837_v44 = vld [vmem:[%s4932_s0 + $0xb8] sm:$0xff]   ;;  %v3859_v45 = vld [vmem:[%s4932_s0 + $0x2a8] sm:$0xff]  }
  0x10   :  { %3663 = vmatprep.mubr.msk.bf16.mxu1 %vm931_vm1, %v3830_v14  ;;  %v3862_v46 = vld [vmem:[%s4932_s0 + $0x2b0] sm:$0xff]   ;;  %v3840_v47 = vld [vmem:[%s4932_s0 + $0xc0] sm:$0xff]   ;;  %v3841_v48 = vld [vmem:[%s4932_s0 + $0xc8] sm:$0xff]  }
  0x11   :  { %v3863_v49 = vld [vmem:[%s4932_s0 + $0x2b8] sm:$0xff]   ;;  %v3866_v50 = vld [vmem:[%s4932_s0 + $0x2c0] sm:$0xff]   ;;  %v3844_v51 = vld [vmem:[%s4932_s0 + $0xd0] sm:$0xff]  }
  0x12   :  { %v3867_v52 = vld [vmem:[%s4932_s0 + $0x2c8] sm:$0xff]   ;;  %v3845_v53 = vld [vmem:[%s4932_s0 + $0xd8] sm:$0xff]   ;;  %v3870_v54 = vld [vmem:[%s4932_s0 + $0x2d0] sm:$0xff]  }
  0x13   :  { %v3848_v55 = vld [vmem:[%s4932_s0 + $0xe0] sm:$0xff]   ;;  %v3871_v56 = vld [vmem:[%s4932_s0 + $0x2d8] sm:$0xff]   ;;  %v3849_v57 = vld [vmem:[%s4932_s0 + $0xe8] sm:$0xff]  }
  0x14   :  { %v3874_v58 = vld [vmem:[%s4932_s0 + $0x2e0] sm:$0xff]   ;;  %v3852_v59 = vld [vmem:[%s4932_s0 + $0xf0] sm:$0xff]   ;;  %v3875_v60 = vld [vmem:[%s4932_s0 + $0x2e8] sm:$0xff]  }
  0x15   :  { %v3853_v61 = vld [vmem:[%s4932_s0 + $0xf8] sm:$0xff]   ;;  %v3878_v62 = vld [vmem:[%s4932_s0 + $0x2f0] sm:$0xff]   ;;  %v3856_v63 = vld [vmem:[%s4932_s0 + $0x100] sm:$0xff]  }
  0x16   :  { %3532 = vmatmul.mubr.msk.bf16.gmra.mxu0 %vm931_vm1, %v3811_v7  ;;  %v3879_v0 = vld [vmem:[%s4932_s0 + $0x2f8] sm:$0xff]   ;;  %v3857_v1 = vld [vmem:[%s4932_s0 + $0x108] sm:$0xff]   ;;  %v3882_v2 = vld [vmem:[%s4932_s0 + $0x300] sm:$0xff]  }
  0x17   :  { %3535 = vmatprep.mubr.msk.bf16.mxu0 %vm931_vm1, %v3812_v8  ;;  %3664 = vmatmul.mubr.msk.bf16.gmra.mxu1 %vm931_vm1, %v3831_v17 }
  0x18   :  { %3667 = vmatprep.mubr.msk.bf16.mxu1 %vm931_vm1, %v3834_v18 }
  0x1e   :  { %3536 = vmatmul.mubr.msk.bf16.gmra.mxu0 %vm931_vm1, %v3813_v12 }
  0x1f   :  { %3539 = vmatprep.mubr.msk.bf16.mxu0 %vm931_vm1, %v3814_v15  ;;  %3668 = vmatmul.mubr.msk.bf16.gmra.mxu1 %vm931_vm1, %v3835_v21 }
  0x20   :  { %3671 = vmatprep.mubr.msk.bf16.mxu1 %vm931_vm1, %v3838_v22 }
  0x26   :  { %3540 = vmatmul.mubr.msk.bf16.gmra.mxu0 %vm931_vm1, %v3815_v16 }
  0x27   :  { %3543 = vmatprep.mubr.msk.bf16.mxu0 %vm931_vm1, %v3816_v19  ;;  %3672 = vmatmul.mubr.msk.bf16.gmra.mxu1 %vm931_vm1, %v3839_v25 }
  0x28   :  { %3675 = vmatprep.mubr.msk.bf16.mxu1 %vm931_vm1, %v3842_v26 }
  0x2e   :  { %3544 = vmatmul.mubr.msk.bf16.gmra.mxu0 %vm931_vm1, %v3817_v20 }
  0x2f   :  { %3547 = vmatprep.mubr.msk.bf16.mxu0 %vm931_vm1, %v3818_v23  ;;  %3676 = vmatmul.mubr.msk.bf16.gmra.mxu1 %vm931_vm1, %v3843_v29 }
  0x30   :  { %3679 = vmatprep.mubr.msk.bf16.mxu1 %vm931_vm1, %v3846_v30 }
  0x36   :  { %3548 = vmatmul.mubr.msk.bf16.gmra.mxu0 %vm931_vm1, %v3819_v24 }
  0x37   :  { %3551 = vmatprep.mubr.msk.bf16.mxu0 %vm931_vm1, %v3820_v27  ;;  %3680 = vmatmul.mubr.msk.bf16.gmra.mxu1 %vm931_vm1, %v3847_v33 }
  0x38   :  { %3683 = vmatprep.mubr.msk.bf16.mxu1 %vm931_vm1, %v3850_v34 }
  0x3e   :  { %3552 = vmatmul.mubr.msk.bf16.gmra.mxu0 %vm931_vm1, %v3821_v28 }
  0x3f   :  { %3555 = vmatprep.mubr.msk.bf16.mxu0 %vm931_vm1, %v3824_v31  ;;  %3684 = vmatmul.mubr.msk.bf16.gmra.mxu1 %vm931_vm1, %v3851_v37 }
  0x40   :  { %3687 = vmatprep.mubr.msk.bf16.mxu1 %vm931_vm1, %v3854_v38 }
  0x46   :  { %3556 = vmatmul.mubr.msk.bf16.gmra.mxu0 %vm931_vm1, %v3825_v32 }
  0x47   :  { %3559 = vmatprep.mubr.msk.bf16.mxu0 %vm931_vm1, %v3828_v35  ;;  %3688 = vmatmul.mubr.msk.bf16.gmra.mxu1 %vm931_vm1, %v3855_v41 }
  0x48   :  { %3691 = vmatprep.mubr.msk.bf16.mxu1 %vm931_vm1, %v3858_v42 }
  0x4e   :  { %3560 = vmatmul.mubr.msk.bf16.gmra.mxu0 %vm931_vm1, %v3829_v36 }
  0x4f   :  { %3563 = vmatprep.mubr.msk.bf16.mxu0 %vm931_vm1, %v3832_v39  ;;  %3692 = vmatmul.mubr.msk.bf16.gmra.mxu1 %vm931_vm1, %v3859_v45 }
  0x50   :  { %3695 = vmatprep.mubr.msk.bf16.mxu1 %vm931_vm1, %v3862_v46 }
  0x56   :  { %3564 = vmatmul.mubr.msk.bf16.gmra.mxu0 %vm931_vm1, %v3833_v40 }
  0x57   :  { %3567 = vmatprep.mubr.msk.bf16.mxu0 %vm931_vm1, %v3836_v43  ;;  %3696 = vmatmul.mubr.msk.bf16.gmra.mxu1 %vm931_vm1, %v3863_v49 }
  0x58   :  { %3699 = vmatprep.mubr.msk.bf16.mxu1 %vm931_vm1, %v3866_v50 }
  0x5e   :  { %3568 = vmatmul.mubr.msk.bf16.gmra.mxu0 %vm931_vm1, %v3837_v44 }
  0x5f   :  { %3571 = vmatprep.mubr.msk.bf16.mxu0 %vm931_vm1, %v3840_v47  ;;  %3700 = vmatmul.mubr.msk.bf16.gmra.mxu1 %vm931_vm1, %v3867_v52 }
  0x60   :  { %3703 = vmatprep.mubr.msk.bf16.mxu1 %vm931_vm1, %v3870_v54 }
  0x66   :  { %3572 = vmatmul.mubr.msk.bf16.gmra.mxu0 %vm931_vm1, %v3841_v48 }
  0x67   :  { %3575 = vmatprep.mubr.msk.bf16.mxu0 %vm931_vm1, %v3844_v51  ;;  %3704 = vmatmul.mubr.msk.bf16.gmra.mxu1 %vm931_vm1, %v3871_v56 }
  0x68   :  { %3707 = vmatprep.mubr.msk.bf16.mxu1 %vm931_vm1, %v3874_v58 }
  0x6e   :  { %3576 = vmatmul.mubr.msk.bf16.gmra.mxu0 %vm931_vm1, %v3845_v53 }
  0x6f   :  { %3579 = vmatprep.mubr.msk.bf16.mxu0 %vm931_vm1, %v3848_v55  ;;  %3708 = vmatmul.mubr.msk.bf16.gmra.mxu1 %vm931_vm1, %v3875_v60 }
  0x70   :  { %3711 = vmatprep.mubr.msk.bf16.mxu1 %vm931_vm1, %v3878_v62 }
  0x76   :  { %3580 = vmatmul.mubr.msk.bf16.gmra.mxu0 %vm931_vm1, %v3849_v57 }
  0x77   :  { %3583 = vmatprep.mubr.msk.bf16.mxu0 %vm931_vm1, %v3852_v59 }
  0x7e   :  { %3584 = vmatmul.mubr.msk.bf16.gmra.mxu0 %vm931_vm1, %v3853_v61 }
  0x7f   :  { %3587 = vmatprep.mubr.msk.bf16.mxu0 %vm931_vm1, %v3856_v63 }
  0x80   :  { %10 = vsyncpa [#allocation4], 0  ;;  %v3860_v3 = vld [vmem:[%s4932_s0 + $0x110] sm:$0xff]   ;;  %3712 = vmatmul.mubr.msk.bf16.gmra.mxu1 %vm931_vm1, %v3879_v0  ;;  %v3883_v4 = vld [vmem:[%s4932_s0 + $0x308] sm:$0xff]   ;;  %v3968_v29 = vmov 0.0   ;;  %vm2978_vm2 = vcmask 1041409  }
  0x81   :  { %3715 = vmatprep.mubr.msk.bf16.mxu1 %vm931_vm1, %v3882_v2  ;;  %v3861_v5 = vld [vmem:[%s4932_s0 + $0x118] sm:$0xff]   ;;  %v3886_v6 = vld [vmem:[%s4932_s0 + $0x310] sm:$0xff]   ;;  %v3864_v7 = vld [vmem:[%s4932_s0 + $0x120] sm:$0xff]   ;;  %3779 = vmatprep.subr.bf16.mxu1 %v3968_v29  ;;  %vm3969_vm3 = vmmov 0   ;;  %vm2980_vm4 = vcmask 1042434   ;;  %vm2982_vm5 = vcmask 1043459  }
  0x82   :  { %v3887_v8 = vld [vmem:[%s4932_s0 + $0x318] sm:$0xff]   ;;  %v3865_v9 = vld [vmem:[%s4932_s0 + $0x128] sm:$0xff]   ;;  %v3890_v10 = vld [vmem:[%s4932_s0 + $0x320] sm:$0xff]   ;;  %vm2984_vm6 = vcmask 1044484   ;;  %vm2986_vm7 = vcmask 1045509   ;;  %vm2988_vm8 = vcmask 1046534  }
  0x83   :  { %v3868_v11 = vld [vmem:[%s4932_s0 + $0x130] sm:$0xff]   ;;  %v3891_v12 = vld [vmem:[%s4932_s0 + $0x328] sm:$0xff]   ;;  %v3869_v13 = vld [vmem:[%s4932_s0 + $0x138] sm:$0xff]   ;;  %vm2990_vm9 = vcmask 1047559   ;;  %s3970_s11 = smov [#allocation3]  }
  0x84   :  { %v3894_v14 = vld [vmem:[%s4932_s0 + $0x330] sm:$0xff]   ;;  %v3872_v15 = vld [vmem:[%s4932_s0 + $0x140] sm:$0xff]   ;;  %v3895_v16 = vld [vmem:[%s4932_s0 + $0x338] sm:$0xff]   ;;  %s3109_s12 = sshll.u32 %s3970_s11, 4  ;;  %s3110_s12 = int_to_ptr.vmem [resolvable:$true] %s3109_s12 }
  0x85   :  { %v3873_v17 = vld [vmem:[%s4932_s0 + $0x148] sm:$0xff]   ;;  %v3898_v18 = vld [vmem:[%s4932_s0 + $0x340] sm:$0xff]   ;;  %v3876_v19 = vld [vmem:[%s4932_s0 + $0x150] sm:$0xff]   ;;  %s3946_s13 = scalar_lea.vmem %s3110_s12, 128  ;;  %p3951_p1 = scmp.lt.s32.totalorder %s3110_s12, %s3110_s12 }
  0x86   :  { %3588 = vmatmul.mubr.msk.bf16.gmra.mxu0 %vm931_vm1, %v3857_v1  ;;  %v3899_v20 = vld [vmem:[%s4932_s0 + $0x348] sm:$0xff]   ;;  %v3877_v21 = vld [vmem:[%s4932_s0 + $0x158] sm:$0xff]   ;;  %v3902_v22 = vld [vmem:[%s4932_s0 + $0x350] sm:$0xff]   ;;  %p3947_p0 = scmp.ne.s32.totalorder %s3110_s12, %s3946_s13  ;;  %p3952_p2 = scmp.lt.s32.totalorder %s3946_s13, %s3946_s13 }
  0x87   :  { %3591 = vmatprep.mubr.msk.bf16.mxu0 %vm931_vm1, %v3860_v3  ;;  %v3880_v23 = vld [vmem:[%s4932_s0 + $0x160] sm:$0xff]   ;;  %v3903_v24 = vld [vmem:[%s4932_s0 + $0x358] sm:$0xff]   ;;  %v3881_v25 = vld [vmem:[%s4932_s0 + $0x168] sm:$0xff]  }
  0x88   :  { %3716 = vmatmul.mubr.msk.bf16.gmra.mxu1 %vm931_vm1, %v3883_v4  ;;  %v3906_v26 = vld [vmem:[%s4932_s0 + $0x360] sm:$0xff]   ;;  %v3884_v27 = vld [vmem:[%s4932_s0 + $0x170] sm:$0xff]   ;;  %v3932_v28 = vld [vmem:[%s4935_s3 + $0x38] sm:$0xff]   ;;  %p3953_p3 = por %p3952_p2, %p3951_p1 }
  0x89   :  { %3719 = vmatprep.mubr.msk.bf16.mxu1 %vm931_vm1, %v3886_v6  ;;  %3780 = vmatpush3.bf16.msra.mxu1 %v3932_v28  ;;  %v3907_v30 = vld [vmem:[%s4932_s0 + $0x368] sm:$0xff]   ;;  %v3885_v31 = vld [vmem:[%s4932_s0 + $0x178] sm:$0xff]   ;;  %v3910_v32 = vld [vmem:[%s4932_s0 + $0x370] sm:$0xff]  }
  0x8a   :  { %3781 = vmatprep.subr.bf16.mxu1 %v3968_v29  ;;  %v3888_v33 = vld [vmem:[%s4932_s0 + $0x180] sm:$0xff]   ;;  %v3911_v34 = vld [vmem:[%s4932_s0 + $0x378] sm:$0xff]   ;;  %v3889_v35 = vld [vmem:[%s4932_s0 + $0x188] sm:$0xff]   ;;  %p3954_p4 = pnand %p3953_p3, %p3947_p0 }
  0x8b   :  { %v3914_v36 = vld [vmem:[%s4932_s0 + $0x380] sm:$0xff]   ;;  %v3892_v37 = vld [vmem:[%s4932_s0 + $0x190] sm:$0xff]   ;;  %v3915_v40 = vld [vmem:[%s4932_s0 + $0x388] sm:$0xff]  }
  0x8c   :  { %v4407_v41 = vld [vmem:[%s4934_s2] ss:$0 sm:$0xff]  ;;  %v3893_v43 = vld [vmem:[%s4932_s0 + $0x198] sm:$0xff]   ;;  %v3918_v44 = vld [vmem:[%s4932_s0 + $0x390] sm:$0xff]  }
  0x8d   :  { %v3896_v46 = vld [vmem:[%s4932_s0 + $0x1a0] sm:$0xff]   ;;  %v3919_v58 = vld [vmem:[%s4932_s0 + $0x398] sm:$0xff]   ;;  %v3897_v60 = vld [vmem:[%s4932_s0 + $0x1a8] sm:$0xff]  }
  0x8e   :  { %3592 = vmatmul.mubr.msk.bf16.gmra.mxu0 %vm931_vm1, %v3861_v5  ;;  %v3922_v61 = vld [vmem:[%s4932_s0 + $0x3a0] sm:$0xff]   ;;  %v3900_v0 = vld [vmem:[%s4932_s0 + $0x1b0] sm:$0xff]  }
  0x8f   :  { %3595 = vmatprep.mubr.msk.bf16.mxu0 %vm931_vm1, %v3864_v7 }
  0x90   :  { %3720 = vmatmul.mubr.msk.bf16.gmra.mxu1 %vm931_vm1, %v3887_v8 }
  0x91   :  { %3723 = vmatprep.mubr.msk.bf16.mxu1 %vm931_vm1, %v3890_v10 }
  0x96   :  { %3596 = vmatmul.mubr.msk.bf16.gmra.mxu0 %vm931_vm1, %v3865_v9 }
  0x97   :  { %3599 = vmatprep.mubr.msk.bf16.mxu0 %vm931_vm1, %v3868_v11 }
  0x98   :  { %3724 = vmatmul.mubr.msk.bf16.gmra.mxu1 %vm931_vm1, %v3891_v12 }
  0x99   :  { %3727 = vmatprep.mubr.msk.bf16.mxu1 %vm931_vm1, %v3894_v14 }
  0x9e   :  { %3600 = vmatmul.mubr.msk.bf16.gmra.mxu0 %vm931_vm1, %v3869_v13 }
  0x9f   :  { %3603 = vmatprep.mubr.msk.bf16.mxu0 %vm931_vm1, %v3872_v15 }
  0xa0   :  { %3728 = vmatmul.mubr.msk.bf16.gmra.mxu1 %vm931_vm1, %v3895_v16 }
  0xa1   :  { %3731 = vmatprep.mubr.msk.bf16.mxu1 %vm931_vm1, %v3898_v18 }
  0xa6   :  { %3604 = vmatmul.mubr.msk.bf16.gmra.mxu0 %vm931_vm1, %v3873_v17  ;;  %v3923_v17 = vld [vmem:[%s4932_s0 + $0x3a8] sm:$0xff]  }
  0xa7   :  { %3607 = vmatprep.mubr.msk.bf16.mxu0 %vm931_vm1, %v3876_v19  ;;  %v3901_v19 = vld [vmem:[%s4932_s0 + $0x1b8] sm:$0xff]  }
  0xa8   :  { %3732 = vmatmul.mubr.msk.bf16.gmra.mxu1 %vm931_vm1, %v3899_v20  ;;  %v3924_v20 = vld [vmem:[%s4932_s0 + $0x3b0] sm:$0xff]  }
  0xa9   :  { %3735 = vmatprep.mubr.msk.bf16.mxu1 %vm931_vm1, %v3902_v22 }
  0xae   :  { %3608 = vmatmul.mubr.msk.bf16.gmra.mxu0 %vm931_vm1, %v3877_v21 }
  0xaf   :  { %3611 = vmatprep.mubr.msk.bf16.mxu0 %vm931_vm1, %v3880_v23  ;;  %v3904_v23 = vld [vmem:[%s4932_s0 + $0x1c0] sm:$0xff]  }
  0xb0   :  { %3736 = vmatmul.mubr.msk.bf16.gmra.mxu1 %vm931_vm1, %v3903_v24 }
  0xb1   :  { %3739 = vmatprep.mubr.msk.bf16.mxu1 %vm931_vm1, %v3906_v26 }
  0xb6   :  { %3612 = vmatmul.mubr.msk.bf16.gmra.mxu0 %vm931_vm1, %v3881_v25 }
  0xb7   :  { %3615 = vmatprep.mubr.msk.bf16.mxu0 %vm931_vm1, %v3884_v27 }
  0xb8   :  { %3740 = vmatmul.mubr.msk.bf16.gmra.mxu1 %vm931_vm1, %v3907_v30 }
  0xb9   :  { %3743 = vmatprep.mubr.msk.bf16.mxu1 %vm931_vm1, %v3910_v32 }
  0xbe   :  { %3616 = vmatmul.mubr.msk.bf16.gmra.mxu0 %vm931_vm1, %v3885_v31 }
  0xbf   :  { %3619 = vmatprep.mubr.msk.bf16.mxu0 %vm931_vm1, %v3888_v33 }
  0xc0   :  { %3744 = vmatmul.mubr.msk.bf16.gmra.mxu1 %vm931_vm1, %v3911_v34 }
  0xc1   :  { %3747 = vmatprep.mubr.msk.bf16.mxu1 %vm931_vm1, %v3914_v36 }
  0xc6   :  { %v3525_v38 = vpop.f32.mrf.mxu0  ;;  %3620 = vmatmul.mubr.msk.bf16.gmra.mxu0 %vm931_vm1, %v3889_v35 }
  0xc7   :  { %3623 = vmatprep.mubr.msk.bf16.mxu0 %vm931_vm1, %v3892_v37  ;;  %v1363_v48 = vadd.f32 %v3525_v38, %v4407_v41  ;;  %v4441_v6 = vpop.f32.mrf.mxu1 }
  0xc8   :  { %v1354_v39 = vpop.f32.mrf.mxu0  ;;  %3748 = vmatmul.mubr.msk.bf16.gmra.mxu1 %vm931_vm1, %v3915_v40 }
  0xc9   :  { %v1355_v45 = vadd.f32 %v4407_v41, %v1354_v39  ;;  %3751 = vmatprep.mubr.msk.bf16.mxu1 %vm931_vm1, %v3918_v44  ;;  %v2379_v55 = vmax.f32 %v1363_v48, 0.0  ;;  %v4448_v11 = vpop.f32.mrf.mxu1  ;;  %v3935_v44 = vld [vmem:[%s4935_s3 + $0x30] sm:$0xff]  }
  0xca   :  { %v3526_v42 = vpop.f32.mrf.mxu0  ;;  %3782 = vmatpush3.bf16.msra.mxu1 %v3935_v44 }
  0xcb   :  { %v2377_v51 = vmax.f32 %v1355_v45, 0.0  ;;  %v1366_v52 = vadd.f32 %v3526_v42, %v4407_v41  ;;  %v4451_v16 = vpop.f32.mrf.mxu1  ;;  %3783 = vmatprep.subr.bf16.mxu1 %v3968_v29 }
  0xcc   :  { %v1357_v47 = vpop.f32.mrf.mxu0 }
  0xcd   :  { %v1358_v49 = vadd.f32 %v4407_v41, %v1357_v47  ;;  %v2380_v62 = vmax.f32 %v1366_v52, 0.0  ;;  %v4465_v24 = vpop.f32.mrf.mxu1  ;;  %v3926_v47 = vld [vmem:[%s4932_s0 + $0x3c0] sm:$0xff]  }
  0xce   :  { %v3529_v50 = vpop.f32.mrf.mxu0  ;;  %3624 = vmatmul.mubr.msk.bf16.gmra.mxu0 %vm931_vm1, %v3893_v43  ;;  %v3925_v43 = vld [vmem:[%s4932_s0 + $0x3b8] sm:$0xff]  }
  0xcf   :  { %v2378_v53 = vmax.f32 %v1358_v49, 0.0  ;;  %3627 = vmatprep.mubr.msk.bf16.mxu0 %vm931_vm1, %v3896_v46  ;;  %v1379_v2 = vadd.f32 %v3529_v50, %v4407_v41  ;;  %v4469_v31 = vpop.f32.mrf.mxu1  ;;  %v3905_v46 = vld [vmem:[%s4932_s0 + $0x1c8] sm:$0xff]   ;;  %v3908_v50 = vld [vmem:[%s4932_s0 + $0x1d0] sm:$0xff]  }
  0xd0   :  { %v1370_v54 = vpop.f32.mrf.mxu0  ;;  %3752 = vmatmul.mubr.msk.bf16.gmra.mxu1 %vm931_vm1, %v3919_v58 }
  0xd1   :  { %v2633_v56 = vadd.f32 %v2378_v53, %v2377_v51  ;;  %v1371_v57 = vadd.f32 %v4407_v41, %v1370_v54  ;;  %3755 = vmatprep.mubr.msk.bf16.mxu1 %vm931_vm1, %v3922_v61  ;;  %v2383_v13 = vmax.f32 %v1379_v2, 0.0  ;;  %v4476_v36 = vpop.f32.mrf.mxu1 }
  0xd2   :  { %v3530_v59 = vpop.f32.mrf.mxu0 }
  0xd3   :  { %v2634_v63 = vadd.f32 %v2633_v56, %v2379_v55  ;;  %v2381_v3 = vmax.f32 %v1371_v57, 0.0  ;;  %v1382_v9 = vadd.f32 %v3530_v59, %v4407_v41  ;;  %v4479_v42 = vpop.f32.mrf.mxu1 }
  0xd4   :  { %v1373_v1 = vpop.f32.mrf.mxu0 }
  0xd5   :  { %v2635_v4 = vadd.f32 %v2634_v63, %v2380_v62  ;;  %v1374_v5 = vadd.f32 %v4407_v41, %v1373_v1  ;;  %v2384_v21 = vmax.f32 %v1382_v9, 0.0  ;;  %v4496_v51 = vpop.f32.mrf.mxu1 }
  0xd6   :  { %v3533_v7 = vpop.f32.mrf.mxu0  ;;  %3628 = vmatmul.mubr.msk.bf16.gmra.mxu0 %vm931_vm1, %v3897_v60 }
  0xd7   :  { %v2636_v8 = vadd.f32 %v2635_v4, %v2381_v3  ;;  %v2382_v10 = vmax.f32 %v1374_v5, 0.0  ;;  %3631 = vmatprep.mubr.msk.bf16.mxu0 %vm931_vm1, %v3900_v0  ;;  %v1395_v26 = vadd.f32 %v3533_v7, %v4407_v41  ;;  %v4501_v57 = vpop.f32.mrf.mxu1  ;;  %v3927_v4 = vld [vmem:[%s4932_s0 + $0x3c8] sm:$0xff]   ;;  %v3909_v7 = vld [vmem:[%s4932_s0 + $0x1d8] sm:$0xff]  }
  0xd8   :  { %v1386_v12 = vpop.f32.mrf.mxu0  ;;  %3756 = vmatmul.mubr.msk.bf16.gmra.mxu1 %vm931_vm1, %v3923_v17 }
  0xd9   :  { %v2637_v14 = vadd.f32 %v2636_v8, %v2382_v10  ;;  %v1387_v15 = vadd.f32 %v4407_v41, %v1386_v12  ;;  %3759 = vmatprep.mubr.msk.bf16.mxu1 %vm931_vm1, %v3924_v20  ;;  %v2387_v38 = vmax.f32 %v1395_v26, 0.0  ;;  %v4508_v62 = vpop.f32.mrf.mxu1  ;;  %v3928_v8 = vld [vmem:[%s4932_s0 + $0x3d0] sm:$0xff]   ;;  %v3912_v12 = vld [vmem:[%s4932_s0 + $0x1e0] sm:$0xff]  }
  0xda   :  { %v3534_v18 = vpop.f32.mrf.mxu0 }
  0xdb   :  { %v2638_v22 = vadd.f32 %v2637_v14, %v2383_v13  ;;  %v2385_v27 = vmax.f32 %v1387_v15, 0.0  ;;  %v1398_v34 = vadd.f32 %v3534_v18, %v4407_v41  ;;  %v4511_v3 = vpop.f32.mrf.mxu1 }
  0xdc   :  { %v1389_v25 = vpop.f32.mrf.mxu0 }
  0xdd   :  { %v2639_v28 = vadd.f32 %v2638_v22, %v2384_v21  ;;  %v1390_v30 = vadd.f32 %v4407_v41, %v1389_v25  ;;  %v2388_v48 = vmax.f32 %v1398_v34, 0.0  ;;  %v4525_v13 = vpop.f32.mrf.mxu1  ;;  %v3929_v34 = vld [vmem:[%s4932_s0 + $0x3d8] sm:$0xff]  }
  0xde   :  { %v3537_v32 = vpop.f32.mrf.mxu0  ;;  %3632 = vmatmul.mubr.msk.bf16.gmra.mxu0 %vm931_vm1, %v3901_v19 }
  0xdf   :  { %v2640_v33 = vadd.f32 %v2639_v28, %v2385_v27  ;;  %v2386_v35 = vmax.f32 %v1390_v30, 0.0  ;;  %3635 = vmatprep.mubr.msk.bf16.mxu0 %vm931_vm1, %v3904_v23  ;;  %v1411_v53 = vadd.f32 %v3537_v32, %v4407_v41  ;;  %v4529_v20 = vpop.f32.mrf.mxu1 }
  0xe0   :  { %v1402_v37 = vpop.f32.mrf.mxu0  ;;  %3760 = vmatmul.mubr.msk.bf16.gmra.mxu1 %vm931_vm1, %v3925_v43  ;;  %v3916_v43 = vld [vmem:[%s4932_s0 + $0x1f0] sm:$0xff]  }
  0xe1   :  { %v2641_v39 = vadd.f32 %v2640_v33, %v2386_v35  ;;  %v1403_v40 = vadd.f32 %v4407_v41, %v1402_v37  ;;  %3763 = vmatprep.mubr.msk.bf16.mxu1 %vm931_vm1, %v3926_v47  ;;  %v2391_v0 = vmax.f32 %v1411_v53, 0.0  ;;  %v4536_v26 = vpop.f32.mrf.mxu1  ;;  %v3913_v37 = vld [vmem:[%s4932_s0 + $0x1e8] sm:$0xff]  }
  0xe2   :  { %v3538_v45 = vpop.f32.mrf.mxu0 }
  0xe3   :  { %v2642_v49 = vadd.f32 %v2641_v39, %v2387_v38  ;;  %v2389_v54 = vmax.f32 %v1403_v40, 0.0  ;;  %v1414_v60 = vadd.f32 %v3538_v45, %v4407_v41  ;;  %v4539_v33 = vpop.f32.mrf.mxu1  ;;  %v3930_v38 = vld [vmem:[%s4932_s0 + $0x3e0] sm:$0xff]   ;;  %v3936_v45 = vld [vmem:[%s4935_s3 + $0x28] sm:$0xff]  }
  0xe4   :  { %v1405_v52 = vpop.f32.mrf.mxu0  ;;  %3784 = vmatpush3.bf16.msra.mxu1 %v3936_v45 }
  0xe5   :  { %v2643_v55 = vadd.f32 %v2642_v49, %v2388_v48  ;;  %v1406_v56 = vadd.f32 %v4407_v41, %v1405_v52  ;;  %v2392_v9 = vmax.f32 %v1414_v60, 0.0  ;;  %v4553_v44 = vpop.f32.mrf.mxu1  ;;  %3785 = vmatprep.subr.bf16.mxu1 %v3968_v29 }
  0xe6   :  { %v3541_v58 = vpop.f32.mrf.mxu0  ;;  %3636 = vmatmul.mubr.msk.bf16.gmra.mxu0 %vm931_vm1, %v3905_v46 }
  0xe7   :  { %v2644_v59 = vadd.f32 %v2643_v55, %v2389_v54  ;;  %v2390_v61 = vmax.f32 %v1406_v56, 0.0  ;;  %3639 = vmatprep.mubr.msk.bf16.mxu0 %vm931_vm1, %v3908_v50  ;;  %v1427_v15 = vadd.f32 %v3541_v58, %v4407_v41  ;;  %v4560_v52 = vpop.f32.mrf.mxu1 }
  0xe8   :  { %v1418_v63 = vpop.f32.mrf.mxu0  ;;  %3764 = vmatmul.mubr.msk.bf16.gmra.mxu1 %vm931_vm1, %v3927_v4  ;;  %v3917_v4 = vld [vmem:[%s4932_s0 + $0x1f8] sm:$0xff]  }
  0xe9   :  { %v2645_v1 = vadd.f32 %v2644_v59, %v2390_v61  ;;  %v1419_v2 = vadd.f32 %v4407_v41, %v1418_v63  ;;  %3767 = vmatprep.mubr.msk.bf16.mxu1 %vm931_vm1, %v3928_v8  ;;  %v2395_v28 = vmax.f32 %v1427_v15, 0.0  ;;  %v4567_v58 = vpop.f32.mrf.mxu1 }
  0xea   :  { %v3542_v5 = vpop.f32.mrf.mxu0 }
  0xeb   :  { %v2646_v10 = vadd.f32 %v2645_v1, %v2391_v0  ;;  %v2393_v17 = vmax.f32 %v1419_v2, 0.0  ;;  %v1430_v23 = vadd.f32 %v3542_v5, %v4407_v41  ;;  %v4571_v0 = vpop.f32.mrf.mxu1  ;;  %v3931_v1 = vld [vmem:[%s4932_s0 + $0x3e8] sm:$0xff]   ;;  %v3933_v5 = vld [vmem:[%s4932_s0 + $0x3f0] sm:$0xff]  }
  0xec   :  { %v1421_v14 = vpop.f32.mrf.mxu0 }
  0xed   :  { %v2647_v18 = vadd.f32 %v2646_v10, %v2392_v9  ;;  %v1422_v19 = vadd.f32 %v4407_v41, %v1421_v14  ;;  %v2396_v39 = vmax.f32 %v1430_v23, 0.0  ;;  %v3920_v9 = vld [vmem:[%s4932_s0 + $0x200] sm:$0xff]   ;;  %v4585_v10 = vpop.f32.mrf.mxu1 }
  0xee   :  { %v3545_v21 = vpop.f32.mrf.mxu0  ;;  %3640 = vmatmul.mubr.msk.bf16.gmra.mxu0 %vm931_vm1, %v3909_v7 }
  0xef   :  { %v2648_v22 = vadd.f32 %v2647_v18, %v2393_v17  ;;  %v2394_v25 = vmax.f32 %v1422_v19, 0.0  ;;  %3643 = vmatprep.mubr.msk.bf16.mxu0 %vm931_vm1, %v3912_v12  ;;  %v1443_v47 = vadd.f32 %v3545_v21, %v4407_v41  ;;  %v4589_v19 = vpop.f32.mrf.mxu1 }
  0xf0   :  { %v1434_v27 = vpop.f32.mrf.mxu0  ;;  %3768 = vmatmul.mubr.msk.bf16.gmra.mxu1 %vm931_vm1, %v3929_v34 }
  0xf1   :  { %v2649_v30 = vadd.f32 %v2648_v22, %v2394_v25  ;;  %v1435_v32 = vadd.f32 %v4407_v41, %v1434_v27  ;;  %3771 = vmatprep.mubr.msk.bf16.mxu1 %vm931_vm1, %v3930_v38  ;;  %v2399_v60 = vmax.f32 %v1443_v47, 0.0  ;;  %v4596_v27 = vpop.f32.mrf.mxu1 }
  0xf2   :  { %v3546_v35 = vpop.f32.mrf.mxu0 }
  0xf3   :  { %v2650_v40 = vadd.f32 %v2649_v30, %v2395_v28  ;;  %v2397_v48 = vmax.f32 %v1435_v32, 0.0  ;;  %v1446_v55 = vadd.f32 %v3546_v35, %v4407_v41  ;;  %v4599_v35 = vpop.f32.mrf.mxu1 }
  0xf4   :  { %v1437_v46 = vpop.f32.mrf.mxu0 }
  0xf5   :  { %v2651_v49 = vadd.f32 %v2650_v40, %v2396_v39  ;;  %v1438_v50 = vadd.f32 %v4407_v41, %v1437_v46  ;;  %v2400_v7 = vmax.f32 %v1446_v55, 0.0  ;;  %v3921_v39 = vld [vmem:[%s4932_s0 + $0x208] sm:$0xff]   ;;  %v4607_v45 = vpop.f32.mrf.mxu1 }
  0xf6   :  { %v3549_v53 = vpop.f32.mrf.mxu0  ;;  %3644 = vmatmul.mubr.msk.bf16.gmra.mxu0 %vm931_vm1, %v3913_v37  ;;  %v3934_v37 = vld [vmem:[%s4932_s0 + $0x3f8] sm:$0xff]  }
  0xf7   :  { %v2652_v54 = vadd.f32 %v2651_v49, %v2397_v48  ;;  %v2398_v56 = vmax.f32 %v1438_v50, 0.0  ;;  %3647 = vmatprep.mubr.msk.bf16.mxu0 %vm931_vm1, %v3916_v43  ;;  %v1459_v14 = vadd.f32 %v3549_v53, %v4407_v41  ;;  %v4611_v53 = vpop.f32.mrf.mxu1 }
  0xf8   :  { %v1450_v59 = vpop.f32.mrf.mxu0  ;;  %3772 = vmatmul.mubr.msk.bf16.gmra.mxu1 %vm931_vm1, %v3931_v1 }
  0xf9   :  { %v2653_v61 = vadd.f32 %v2652_v54, %v2398_v56  ;;  %v1451_v63 = vadd.f32 %v4407_v41, %v1450_v59  ;;  %3775 = vmatprep.mubr.msk.bf16.mxu1 %vm931_vm1, %v3933_v5  ;;  %v2403_v30 = vmax.f32 %v1459_v14, 0.0 }
  0xfa   :  { %v3550_v2 = vpop.f32.mrf.mxu0 }
  0xfb   :  { %v2654_v8 = vadd.f32 %v2653_v61, %v2399_v60  ;;  %v2401_v15 = vmax.f32 %v1451_v63, 0.0  ;;  %v1462_v23 = vadd.f32 %v3550_v2, %v4407_v41  ;;  %v4616_v60 = vpop.f32.mrf.mxu1 }
  0xfc   :  { %v1453_v12 = vpop.f32.mrf.mxu0 }
  0xfd   :  { %v2655_v17 = vadd.f32 %v2654_v8, %v2400_v7  ;;  %v1454_v18 = vadd.f32 %v4407_v41, %v1453_v12  ;;  %v2404_v40 = vmax.f32 %v1462_v23, 0.0  ;;  %v4618_v2 = vpop.f32.mrf.mxu1 }
  0xfe   :  { %v3553_v21 = vpop.f32.mrf.mxu0  ;;  %3648 = vmatmul.mubr.msk.bf16.gmra.mxu0 %vm931_vm1, %v3917_v4 }
  0xff   :  { %v2656_v22 = vadd.f32 %v2655_v17, %v2401_v15  ;;  %v2402_v25 = vmax.f32 %v1454_v18, 0.0  ;;  %3651 = vmatprep.mubr.msk.bf16.mxu0 %vm931_vm1, %v3920_v9  ;;  %v1475_v47 = vadd.f32 %v3553_v21, %v4407_v41  ;;  %v4621_v9 = vpop.f32.mrf.mxu1 }
 0x100   :  { %v1466_v28 = vpop.f32.mrf.mxu0  ;;  %3776 = vmatmul.mubr.msk.bf16.gmra.mxu1 %vm931_vm1, %v3934_v37 }
 0x101   :  { %v2657_v32 = vadd.f32 %v2656_v22, %v2402_v25  ;;  %v1467_v34 = vadd.f32 %v4407_v41, %v1466_v28  ;;  %v2407_v63 = vmax.f32 %v1475_v47, 0.0  ;;  %v3685_v18 = vpop.f32.mrf.mxu1  ;;  %3795 = vmatprep.mubr.msk.bf16.mxu1 %vm3969_vm3, %v3968_v29 }
 0x102   :  { %v3554_v38 = vpop.f32.mrf.mxu0 }
 0x103   :  { %v2658_v43 = vadd.f32 %v2657_v32, %v2403_v30  ;;  %v2405_v48 = vmax.f32 %v1467_v34, 0.0  ;;  %v1478_v56 = vadd.f32 %v3554_v38, %v4407_v41  ;;  %v1994_v28 = vpop.f32.mrf.mxu1 }
 0x104   :  { %v1469_v46 = vpop.f32.mrf.mxu0  ;;  %v1995_v32 = vadd.f32 %v4407_v41, %v1994_v28 }
 0x105   :  { %v2659_v49 = vadd.f32 %v2658_v43, %v2404_v40  ;;  %v1470_v50 = vadd.f32 %v4407_v41, %v1469_v46  ;;  %v2408_v5 = vmax.f32 %v1478_v56, 0.0  ;;  %v2003_v43 = vadd.f32 %v3685_v18, %v4407_v41 }
 0x106   :  { %v3557_v54 = vpop.f32.mrf.mxu0  ;;  %3652 = vmatmul.mubr.msk.bf16.gmra.mxu0 %vm931_vm1, %v3921_v39  ;;  %v3686_v39 = vpop.f32.mrf.mxu1 }
 0x107   :  { %v2660_v55 = vadd.f32 %v2659_v49, %v2405_v48  ;;  %v2406_v59 = vmax.f32 %v1470_v50, 0.0  ;;  %v1491_v15 = vadd.f32 %v3557_v54, %v4407_v41  ;;  %v2537_v50 = vmax.f32 %v1995_v32, 0.0 }
 0x108   :  { %v1482_v61 = vpop.f32.mrf.mxu0  ;;  %v1997_v48 = vpop.f32.mrf.mxu1  ;;  %v2006_v54 = vadd.f32 %v3686_v39, %v4407_v41 }
 0x109   :  { %v2661_v1 = vadd.f32 %v2660_v55, %v2406_v59  ;;  %v1483_v8 = vadd.f32 %v4407_v41, %v1482_v61  ;;  %v2411_v34 = vmax.f32 %v1491_v15, 0.0  ;;  %v1998_v55 = vadd.f32 %v4407_v41, %v1997_v48 }
 0x10a   :  { %v3558_v4 = vpop.f32.mrf.mxu0 }
 0x10b   :  { %v2662_v7 = vadd.f32 %v2661_v1, %v2407_v63  ;;  %v2409_v22 = vmax.f32 %v1483_v8, 0.0  ;;  %v1494_v23 = vadd.f32 %v3558_v4, %v4407_v41  ;;  %v3689_v1 = vpop.f32.mrf.mxu1 }
 0x10c   :  { %v1485_v12 = vpop.f32.mrf.mxu0 }
 0x10d   :  { %v4623_v14 = vadd.f32 %v2662_v7, %v2408_v5  ;;  %v1486_v17 = vadd.f32 %v4407_v41, %v1485_v12  ;;  %v2412_v46 = vmax.f32 %v1494_v23, 0.0  ;;  %v2539_v5 = vmax.f32 %v2003_v43, 0.0 }
 0x10e   :  { %v3561_v21 = vpop.f32.mrf.mxu0  ;;  %v2538_v7 = vmax.f32 %v1998_v55, 0.0 }
 0x10f   :  { %v2410_v25 = vmax.f32 %v1486_v17, 0.0  ;;  %v1507_v56 = vadd.f32 %v3561_v21, %v4407_v41  ;;  %v2010_v17 = vpop.f32.mrf.mxu1 }
 0x110   :  { %v1498_v30 = vpop.f32.mrf.mxu0  ;;  %v2818_v23 = vadd.f32 %v2538_v7, %v2537_v50 }
 0x111   :  { %v2670_v37 = vadd.f32 %v2410_v25, %v2409_v22  ;;  %v1499_v38 = vadd.f32 %v4407_v41, %v1498_v30  ;;  %v2540_v22 = vmax.f32 %v2006_v54, 0.0  ;;  %v2011_v25 = vadd.f32 %v4407_v41, %v2010_v17  ;;  %v3690_v32 = vpop.f32.mrf.mxu1 }
 0x112   :  { %v3562_v40 = vpop.f32.mrf.mxu0  ;;  %v2415_v28 = vmax.f32 %v1507_v56, 0.0 }
 0x113   :  { %v2671_v47 = vadd.f32 %v2670_v37, %v2411_v34  ;;  %v2413_v59 = vmax.f32 %v1499_v38, 0.0  ;;  %v1510_v12 = vadd.f32 %v3562_v40, %v4407_v41  ;;  %v2819_v37 = vadd.f32 %v2818_v23, %v2539_v5  ;;  %v2013_v40 = vpop.f32.mrf.mxu1 }
 0x114   :  { %v1501_v49 = vpop.f32.mrf.mxu0  ;;  %v2019_v38 = vadd.f32 %v3689_v1, %v4407_v41  ;;  %v2541_v39 = vmax.f32 %v2011_v25, 0.0  ;;  %v2014_v50 = vadd.f32 %v4407_v41, %v2013_v40 }
 0x115   :  { %v2672_v61 = vadd.f32 %v2671_v47, %v2412_v46  ;;  %v1502_v63 = vadd.f32 %v4407_v41, %v1501_v49  ;;  %v2416_v43 = vmax.f32 %v1510_v12, 0.0  ;;  %v2820_v48 = vadd.f32 %v2819_v37, %v2540_v22 }
 0x116   :  { %v3565_v4 = vpop.f32.mrf.mxu0  ;;  %v2022_v49 = vadd.f32 %v3690_v32, %v4407_v41  ;;  %v2543_v5 = vmax.f32 %v2019_v38, 0.0  ;;  %v2542_v7 = vmax.f32 %v2014_v50, 0.0  ;;  %v3937_v32 = vld [vmem:[%s4935_s3 + $0x20] sm:$0xff]  }
 0x117   :  { %v2673_v8 = vadd.f32 %v2672_v61, %v2413_v59  ;;  %v2414_v15 = vmax.f32 %v1502_v63, 0.0  ;;  %v1523_v54 = vadd.f32 %v3565_v4, %v4407_v41  ;;  %v3693_v61 = vpop.f32.mrf.mxu1  ;;  %v2821_v1 = vadd.f32 %v2820_v48, %v2541_v39  ;;  %3786 = vmatpush3.bf16.msra.mxu1 %v3937_v32 }
 0x118   :  { %v1514_v18 = vpop.f32.mrf.mxu0  ;;  %v2544_v22 = vmax.f32 %v2022_v49, 0.0  ;;  %3787 = vmatprep.subr.bf16.mxu1 %v3968_v29 }
 0x119   :  { %v2674_v21 = vadd.f32 %v2673_v8, %v2414_v15  ;;  %v1515_v30 = vadd.f32 %v4407_v41, %v1514_v18  ;;  %v2026_v17 = vpop.f32.mrf.mxu1  ;;  %v2822_v23 = vadd.f32 %v2821_v1, %v2542_v7  ;;  %v2419_v4 = vmax.f32 %v1523_v54, 0.0 }
 0x11a   :  { %v3566_v34 = vpop.f32.mrf.mxu0  ;;  %v2027_v25 = vadd.f32 %v4407_v41, %v2026_v17 }
 0x11b   :  { %v2675_v46 = vadd.f32 %v2674_v21, %v2415_v28  ;;  %v2417_v55 = vmax.f32 %v1515_v30, 0.0  ;;  %v1526_v12 = vadd.f32 %v3566_v34, %v4407_v41  ;;  %v3694_v30 = vpop.f32.mrf.mxu1  ;;  %v2823_v38 = vadd.f32 %v2822_v23, %v2543_v5 }
 0x11c   :  { %v1517_v47 = vpop.f32.mrf.mxu0  ;;  %v2035_v34 = vadd.f32 %v3693_v61, %v4407_v41  ;;  %v2545_v39 = vmax.f32 %v2027_v25, 0.0  ;;  %v2038_v49 = vadd.f32 %v3694_v30, %v4407_v41 }
 0x11d   :  { %v2676_v56 = vadd.f32 %v2675_v46, %v2416_v43  ;;  %v1518_v59 = vadd.f32 %v4407_v41, %v1517_v47  ;;  %v2420_v43 = vmax.f32 %v1526_v12, 0.0  ;;  %v2029_v40 = vpop.f32.mrf.mxu1  ;;  %v2824_v48 = vadd.f32 %v2823_v38, %v2544_v22 }
 0x11e   :  { %v3569_v63 = vpop.f32.mrf.mxu0  ;;  %v2030_v50 = vadd.f32 %v4407_v41, %v2029_v40  ;;  %v2547_v1 = vmax.f32 %v2035_v34, 0.0  ;;  %v2548_v23 = vmax.f32 %v2038_v49, 0.0 }
 0x11f   :  { %v2677_v8 = vadd.f32 %v2676_v56, %v2417_v55  ;;  %v2418_v15 = vmax.f32 %v1518_v59, 0.0  ;;  %v1539_v54 = vadd.f32 %v3569_v63, %v4407_v41  ;;  %v3697_v61 = vpop.f32.mrf.mxu1  ;;  %v2825_v7 = vadd.f32 %v2824_v48, %v2545_v39 }
 0x120   :  { %v1530_v18 = vpop.f32.mrf.mxu0  ;;  %v2051_v34 = vadd.f32 %v3697_v61, %v4407_v41 }
 0x121   :  { %v2678_v28 = vadd.f32 %v2677_v8, %v2418_v15  ;;  %v1531_v21 = vadd.f32 %v4407_v41, %v1530_v18  ;;  %v2546_v8 = vmax.f32 %v2030_v50, 0.0  ;;  %v2042_v18 = vpop.f32.mrf.mxu1  ;;  %v2423_v63 = vmax.f32 %v1539_v54, 0.0 }
 0x122   :  { %v3570_v37 = vpop.f32.mrf.mxu0 }
 0x123   :  { %v2679_v46 = vadd.f32 %v2678_v28, %v2419_v4  ;;  %v2421_v55 = vmax.f32 %v1531_v21, 0.0  ;;  %v1542_v15 = vadd.f32 %v3570_v37, %v4407_v41  ;;  %v2826_v25 = vadd.f32 %v2825_v7, %v2546_v8  ;;  %v3698_v30 = vpop.f32.mrf.mxu1 }
 0x124   :  { %v1533_v47 = vpop.f32.mrf.mxu0  ;;  %v2043_v4 = vadd.f32 %v4407_v41, %v2042_v18  ;;  %v2054_v48 = vadd.f32 %v3698_v30, %v4407_v41  ;;  %v2551_v7 = vmax.f32 %v2051_v34, 0.0 }
 0x125   :  { %v2680_v56 = vadd.f32 %v2679_v46, %v2420_v43  ;;  %v1534_v59 = vadd.f32 %v4407_v41, %v1533_v47  ;;  %v2827_v38 = vadd.f32 %v2826_v25, %v2547_v1  ;;  %v2424_v43 = vmax.f32 %v1542_v15, 0.0  ;;  %v2045_v37 = vpop.f32.mrf.mxu1 }
 0x126   :  { %v3573_v5 = vpop.f32.mrf.mxu0  ;;  %v2549_v39 = vmax.f32 %v2043_v4, 0.0  ;;  %v2046_v49 = vadd.f32 %v4407_v41, %v2045_v37 }
 0x127   :  { %v2681_v12 = vadd.f32 %v2680_v56, %v2421_v55  ;;  %v2422_v17 = vmax.f32 %v1534_v59, 0.0  ;;  %v2828_v47 = vadd.f32 %v2827_v38, %v2548_v23  ;;  %v1555_v50 = vadd.f32 %v3573_v5, %v4407_v41  ;;  %v3701_v59 = vpop.f32.mrf.mxu1 }
 0x128   :  { %v1546_v22 = vpop.f32.mrf.mxu0  ;;  %v2550_v8 = vmax.f32 %v2046_v49, 0.0  ;;  %v2552_v5 = vmax.f32 %v2054_v48, 0.0 }
 0x129   :  { %v2682_v28 = vadd.f32 %v2681_v12, %v2422_v17  ;;  %v1547_v21 = vadd.f32 %v4407_v41, %v1546_v22  ;;  %v2829_v61 = vadd.f32 %v2828_v47, %v2549_v39  ;;  %v2058_v18 = vpop.f32.mrf.mxu1  ;;  %v3938_v22 = vld [vmem:[%s4935_s3 + $0x18] sm:$0xff]  }
 0x12a   :  { %v3574_v32 = vpop.f32.mrf.mxu0  ;;  %v2059_v4 = vadd.f32 %v4407_v41, %v2058_v18  ;;  %3788 = vmatpush3.bf16.msra.mxu1 %v3938_v22 }
 0x12b   :  { %v2683_v46 = vadd.f32 %v2682_v28, %v2423_v63  ;;  %v2425_v54 = vmax.f32 %v1547_v21, 0.0  ;;  %v1558_v15 = vadd.f32 %v3574_v32, %v4407_v41  ;;  %v2830_v25 = vadd.f32 %v2829_v61, %v2550_v8  ;;  %v3702_v30 = vpop.f32.mrf.mxu1  ;;  %3789 = vmatprep.subr.bf16.mxu1 %v3968_v29 }
 0x12c   :  { %v1549_v40 = vpop.f32.mrf.mxu0  ;;  %v2427_v63 = vmax.f32 %v1555_v50, 0.0  ;;  %v2067_v32 = vadd.f32 %v3701_v59, %v4407_v41  ;;  %v2553_v39 = vmax.f32 %v2059_v4, 0.0  ;;  %v2070_v48 = vadd.f32 %v3702_v30, %v4407_v41 }
 0x12d   :  { %v2684_v55 = vadd.f32 %v2683_v46, %v2424_v43  ;;  %v1550_v56 = vadd.f32 %v4407_v41, %v1549_v40  ;;  %v2831_v34 = vadd.f32 %v2830_v25, %v2551_v7  ;;  %v2428_v43 = vmax.f32 %v1558_v15, 0.0  ;;  %v2061_v37 = vpop.f32.mrf.mxu1 }
 0x12e   :  { %v3577_v1 = vpop.f32.mrf.mxu0  ;;  %v2062_v49 = vadd.f32 %v4407_v41, %v2061_v37  ;;  %v2555_v61 = vmax.f32 %v2067_v32, 0.0 }
 0x12f   :  { %v2685_v12 = vadd.f32 %v2684_v55, %v2425_v54  ;;  %v2426_v17 = vmax.f32 %v1550_v56, 0.0  ;;  %v2832_v47 = vadd.f32 %v2831_v34, %v2552_v5  ;;  %v1571_v50 = vadd.f32 %v3577_v1, %v4407_v41  ;;  %v3705_v7 = vpop.f32.mrf.mxu1 }
 0x130   :  { %v1562_v23 = vpop.f32.mrf.mxu0  ;;  %v2556_v5 = vmax.f32 %v2070_v48, 0.0  ;;  %v2083_v32 = vadd.f32 %v3705_v7, %v4407_v41 }
 0x131   :  { %v2686_v28 = vadd.f32 %v2685_v12, %v2426_v17  ;;  %v1563_v21 = vadd.f32 %v4407_v41, %v1562_v23  ;;  %v2833_v8 = vadd.f32 %v2832_v47, %v2553_v39  ;;  %v2554_v12 = vmax.f32 %v2062_v49, 0.0  ;;  %v2074_v22 = vpop.f32.mrf.mxu1 }
 0x132   :  { %v3578_v38 = vpop.f32.mrf.mxu0  ;;  %v2075_v4 = vadd.f32 %v4407_v41, %v2074_v22  ;;  %v2431_v1 = vmax.f32 %v1571_v50, 0.0 }
 0x133   :  { %v2687_v46 = vadd.f32 %v2686_v28, %v2427_v63  ;;  %v2429_v54 = vmax.f32 %v1563_v21, 0.0  ;;  %v1574_v17 = vadd.f32 %v3578_v38, %v4407_v41  ;;  %v2834_v25 = vadd.f32 %v2833_v8, %v2554_v12  ;;  %v3706_v21 = vpop.f32.mrf.mxu1 }
 0x134   :  { %v1565_v40 = vpop.f32.mrf.mxu0  ;;  %v2557_v39 = vmax.f32 %v2075_v4, 0.0  ;;  %v2086_v47 = vadd.f32 %v3706_v21, %v4407_v41  ;;  %v2559_v8 = vmax.f32 %v2083_v32, 0.0 }
 0x135   :  { %v2688_v55 = vadd.f32 %v2687_v46, %v2428_v43  ;;  %v1566_v56 = vadd.f32 %v4407_v41, %v1565_v40  ;;  %v2835_v34 = vadd.f32 %v2834_v25, %v2555_v61  ;;  %v2432_v43 = vmax.f32 %v1574_v17, 0.0  ;;  %v2077_v38 = vpop.f32.mrf.mxu1 }
 0x136   :  { %v3581_v59 = vpop.f32.mrf.mxu0  ;;  %v2078_v48 = vadd.f32 %v4407_v41, %v2077_v38  ;;  %v2664_v61 = vrot.slane %v4623_v14, 4  ;;  %v2560_v25 = vmax.f32 %v2086_v47, 0.0 }
 0x137   :  { %v2689_v15 = vadd.f32 %v2688_v55, %v2429_v54  ;;  %v2430_v18 = vmax.f32 %v1566_v56, 0.0  ;;  %v2836_v40 = vadd.f32 %v2835_v34, %v2556_v5  ;;  %v1587_v49 = vadd.f32 %v3581_v59, %v4407_v41  ;;  %v3709_v56 = vpop.f32.mrf.mxu1 }
 0x138   :  { %v1578_v23 = vpop.f32.mrf.mxu0  ;;  %v2665_v34 = vadd.f32 %v2664_v61, %v4623_v14 }
 0x139   :  { %v2690_v63 = vadd.f32 %v2689_v15, %v2430_v18  ;;  %v1579_v28 = vadd.f32 %v4407_v41, %v1578_v23  ;;  %v2837_v12 = vadd.f32 %v2836_v40, %v2557_v39  ;;  %v2558_v15 = vmax.f32 %v2078_v48, 0.0  ;;  %v2090_v23 = vpop.f32.mrf.mxu1 }
 0x13a   :  { %v3582_v30 = vpop.f32.mrf.mxu0  ;;  %v2091_v59 = vadd.f32 %v4407_v41, %v2090_v23 }
 0x13b   :  { %v2691_v46 = vadd.f32 %v2690_v63, %v2431_v1  ;;  %v2433_v50 = vmax.f32 %v1579_v28, 0.0  ;;  %v1590_v18 = vadd.f32 %v3582_v30, %v4407_v41  ;;  %v2838_v4 = vadd.f32 %v2837_v12, %v2558_v15  ;;  %v3710_v21 = vpop.f32.mrf.mxu1 }
 0x13c   :  { %v1581_v37 = vpop.f32.mrf.mxu0  ;;  %v2435_v1 = vmax.f32 %v1587_v49, 0.0  ;;  %v2102_v48 = vadd.f32 %v3710_v21, %v4407_v41 }
 0x13d   :  { %v2692_v54 = vadd.f32 %v2691_v46, %v2432_v43  ;;  %v1582_v55 = vadd.f32 %v4407_v41, %v1581_v37  ;;  %v2839_v39 = vadd.f32 %v2838_v4, %v2559_v8  ;;  %v2099_v43 = vadd.f32 %v3709_v56, %v4407_v41  ;;  %v2093_v37 = vpop.f32.mrf.mxu1 }
 0x13e   :  { %v3585_v7 = vpop.f32.mrf.mxu0  ;;  %v2561_v46 = vmax.f32 %v2091_v59, 0.0  ;;  %v2436_v30 = vmax.f32 %v1590_v18, 0.0  ;;  %v2094_v49 = vadd.f32 %v4407_v41, %v2093_v37  ;;  %v2666_v8 = vrot.slane %v2665_v34, 2 }
 0x13f   :  { %v2693_v17 = vadd.f32 %v2692_v54, %v2433_v50  ;;  %v2434_v22 = vmax.f32 %v1582_v55, 0.0  ;;  %v2840_v47 = vadd.f32 %v2839_v39, %v2560_v25  ;;  %v1603_v50 = vadd.f32 %v3585_v7, %v4407_v41 }
 0x140   :  { %v1594_v5 = vpop.f32.mrf.mxu0  ;;  %v3713_v61 = vpop.f32.mrf.mxu1  ;;  %v2563_v56 = vmax.f32 %v2099_v43, 0.0  ;;  %v2564_v4 = vmax.f32 %v2102_v48, 0.0  ;;  %v2667_v21 = vadd.f32 %v2666_v8, %v2665_v34 }
 0x141   :  { %v2694_v63 = vadd.f32 %v2693_v17, %v2434_v22  ;;  %v1595_v28 = vadd.f32 %v4407_v41, %v1594_v5  ;;  %v2841_v15 = vadd.f32 %v2840_v47, %v2561_v46  ;;  %v2562_v17 = vmax.f32 %v2094_v49, 0.0 }
 0x142   :  { %v3586_v32 = vpop.f32.mrf.mxu0  ;;  %v2106_v5 = vpop.f32.mrf.mxu1  ;;  %v2115_v43 = vadd.f32 %v3713_v61, %v4407_v41  ;;  %v2668_v8 = vrot.slane %v2667_v21, 1 }
 0x143   :  { %v2695_v38 = vadd.f32 %v2694_v63, %v2435_v1  ;;  %v2437_v54 = vmax.f32 %v1595_v28, 0.0  ;;  %v1606_v22 = vadd.f32 %v3586_v32, %v4407_v41  ;;  %v2842_v59 = vadd.f32 %v2841_v15, %v2562_v17 }
 0x144   :  { %v1597_v40 = vpop.f32.mrf.mxu0  ;;  %v2107_v7 = vadd.f32 %v4407_v41, %v2106_v5  ;;  %v2439_v1 = vmax.f32 %v1603_v50, 0.0  ;;  %v3714_v28 = vpop.f32.mrf.mxu1 }
 0x145   :  { %v2696_v55 = vadd.f32 %v2695_v38, %v2436_v30  ;;  %v1598_v14 = vadd.f32 %v4407_v41, %v1597_v40  ;;  %v2843_v30 = vadd.f32 %v2842_v59, %v2563_v56  ;;  %v2440_v38 = vmax.f32 %v1606_v22, 0.0 }
 0x146   :  { %v3589_v12 = vpop.f32.mrf.mxu0  ;;  %v2565_v46 = vmax.f32 %v2107_v7, 0.0  ;;  %v2109_v40 = vpop.f32.mrf.mxu1  ;;  %v2118_v48 = vadd.f32 %v3714_v28, %v4407_v41  ;;  %v2567_v56 = vmax.f32 %v2115_v43, 0.0  ;;  %v2669_v43 = vadd.f32 %v2668_v8, %v2667_v21 }
 0x147   :  { %v2697_v18 = vadd.f32 %v2696_v55, %v2437_v54  ;;  %v2438_v23 = vmax.f32 %v1598_v14, 0.0  ;;  %v2844_v49 = vadd.f32 %v2843_v30, %v2564_v4  ;;  %v2110_v54 = vadd.f32 %v4407_v41, %v2109_v40 }
 0x148   :  { %v1610_v25 = vpop.f32.mrf.mxu0  ;;  %v1619_v55 = vadd.f32 %v3589_v12, %v4407_v41  ;;  %v3717_v14 = vpop.f32.mrf.mxu1  ;;  %v2568_v59 = vmax.f32 %v2118_v48, 0.0 }
 0x149   :  { %v2698_v63 = vadd.f32 %v2697_v18, %v2438_v23  ;;  %v1611_v32 = vadd.f32 %v4407_v41, %v1610_v25  ;;  %v2845_v15 = vadd.f32 %v2844_v49, %v2565_v46  ;;  %v2566_v17 = vmax.f32 %v2110_v54, 0.0 }
 0x14a   :  { %v3590_v39 = vpop.f32.mrf.mxu0  ;;  %v2122_v25 = vpop.f32.mrf.mxu1 }
 0x14b   :  { %v2699_v37 = vadd.f32 %v2698_v63, %v2439_v1  ;;  %v2441_v22 = vmax.f32 %v1611_v32, 0.0  ;;  %v1622_v23 = vadd.f32 %v3590_v39, %v4407_v41  ;;  %v2846_v7 = vadd.f32 %v2845_v15, %v2566_v17 }
 0x14c   :  { %v1613_v47 = vpop.f32.mrf.mxu0  ;;  %v2123_v1 = vadd.f32 %v4407_v41, %v2122_v25  ;;  %v2443_v63 = vmax.f32 %v1619_v55, 0.0  ;;  %v2131_v32 = vadd.f32 %v3717_v14, %v4407_v41  ;;  %v4711_v55 = vld [vmem:[%s4934_s2] ss:$0 sm:$0xff] }
 0x14d   :  { %v2700_v50 = vadd.f32 %v2699_v37, %v2440_v38  ;;  %v1614_v34 = vadd.f32 %v4407_v41, %v1613_v47  ;;  %v3718_v38 = vpop.f32.mrf.mxu1  ;;  %v2847_v37 = vadd.f32 %v2846_v7, %v2567_v56  ;;  %v2444_v39 = vmax.f32 %v1622_v23, 0.0 }
 0x14e   :  { %v3593_v61 = vpop.f32.mrf.mxu0  ;;  %v2134_v21 = vadd.f32 %v4711_v55, %v3718_v38 }
 0x14f   :  { %v2701_v18 = vrot.slane %v2700_v50, 4  ;;  %v2442_v5 = vmax.f32 %v1614_v34, 0.0  ;;  %v1635_v49 = vadd.f32 %v3593_v61, %v4407_v41  ;;  %v2125_v48 = vpop.f32.mrf.mxu1  ;;  %v4706_v34 = vadd.f32 %v2847_v37, %v2568_v59 }
 0x150   :  { %v1626_v4 = vpop.f32.mrf.mxu0  ;;  %v2126_v8 = vadd.f32 %v4711_v55, %v2125_v48  ;;  %v2929_v61 = vmul.f32 0.00390625, %v2669_v43 }
 0x151   :  { %v2702_v12 = vadd.f32 %v2701_v18, %v2700_v50  ;;  %v2707_v28 = vadd.f32 %v2442_v5, %v2441_v22  ;;  %v1627_v30 = vadd.f32 %v4407_v41, %v1626_v4  ;;  %v2569_v50 = vmax.f32 %v2123_v1, 0.0  ;;  %v3721_v41 = vpop.f32.mrf.mxu1 }
 0x152   :  { %v3594_v46 = vpop.f32.mrf.mxu0  ;;  %v2571_v22 = vmax.f32 %v2131_v32, 0.0  ;;  %v2570_v23 = vmax.f32 %v2126_v8, 0.0  ;;  %v2447_v38 = vmax.f32 %v1635_v49, 0.0  ;;  %v2147_v48 = vadd.f32 %v4711_v55, %v3721_v41 }
 0x153   :  { %v2703_v40 = vrot.slane %v2702_v12, 2  ;;  %v2708_v47 = vadd.f32 %v2707_v28, %v2443_v63  ;;  %v2445_v56 = vmax.f32 %v1627_v30, 0.0  ;;  %v1638_v4 = vadd.f32 %v4711_v55, %v3594_v46  ;;  %v2138_v7 = vpop.f32.mrf.mxu1 }
 0x154   :  { %v1629_v54 = vpop.f32.mrf.mxu0  ;;  %v2572_v63 = vmax.f32 %v2134_v21, 0.0  ;;  %v2855_v28 = vadd.f32 %v2570_v23, %v2569_v50 }
 0x155   :  { %v2704_v14 = vadd.f32 %v2703_v40, %v2702_v12  ;;  %v2709_v15 = vadd.f32 %v2708_v47, %v2444_v39  ;;  %v1630_v17 = vadd.f32 %v4711_v55, %v1629_v54  ;;  %v2139_v12 = vadd.f32 %v4711_v55, %v2138_v7  ;;  %v3722_v43 = vpop.f32.mrf.mxu1 }
 0x156   :  { %v3597_v18 = vpop.f32.mrf.mxu0  ;;  %v2938_v39 = vpack.c.bf16 %v2929_v61, %v2929_v61  ;;  %v2856_v47 = vadd.f32 %v2855_v28, %v2571_v22  ;;  %v2448_v8 = vmax.f32 %v1638_v4, 0.0  ;;  %v2150_v49 = vadd.f32 %v4711_v55, %v3722_v43 }
 0x157   :  { %v2705_v5 = vrot.slane %v2704_v14, 1  ;;  %v2710_v25 = vadd.f32 %v2709_v15, %v2445_v56  ;;  %v2446_v59 = vmax.f32 %v1630_v17, 0.0  ;;  %v2573_v54 = vmax.f32 %v2139_v12, 0.0  ;;  %v2141_v21 = vpop.f32.mrf.mxu1 }
 0x158   :  { %v1642_v1 = vpop.f32.mrf.mxu0  ;;  %v1651_v50 = vadd.f32 %v4711_v55, %v3597_v18  ;;  %v2142_v17 = vadd.f32 %v4711_v55, %v2141_v21  ;;  %v2575_v7 = vmax.f32 %v2147_v48, 0.0 }
 0x159   :  { %v2706_v30 = vadd.f32 %v2705_v5, %v2704_v14  ;;  %v2711_v37 = vadd.f32 %v2710_v25, %v2446_v59  ;;  %v1643_v40 = vadd.f32 %v4711_v55, %v1642_v1  ;;  %v2857_v14 = vadd.f32 %v2856_v47, %v2572_v63  ;;  %v3725_v41 = vpop.f32.mrf.mxu1 }
 0x15a   :  { %v3598_v32 = vpop.f32.mrf.mxu0  ;;  %v2970_v25 = vunpack.c.l.b16 %v2938_v39  ;;  %v2574_v1 = vmax.f32 %v2142_v17, 0.0  ;;  %v2163_v21 = vadd.f32 %v4711_v55, %v3725_v41 }
 0x15b   :  { %v2930_v46 = vmul.f32 0.00390625, %v2706_v30  ;;  %v2712_v56 = vadd.f32 %v2711_v37, %v2447_v38  ;;  %v2449_v61 = vmax.f32 %v1643_v40, 0.0  ;;  %v2858_v4 = vadd.f32 %v2857_v14, %v2573_v54  ;;  %v2154_v30 = vpop.f32.mrf.mxu1 }
 0x15c   :  { %v1645_v15 = vpop.f32.mrf.mxu0  ;;  %v1654_v18 = vadd.f32 %v4711_v55, %v3598_v32  ;;  %v2576_v37 = vmax.f32 %v2150_v49, 0.0  ;;  %v2155_v40 = vadd.f32 %v4711_v55, %v2154_v30 }
 0x15d   :  { %v2939_v23 = vpack.c.bf16 %v2930_v46, %v2930_v46  ;;  %v2713_v5 = vadd.f32 %v2712_v56, %v2448_v8  ;;  %v1646_v22 = vadd.f32 %v4711_v55, %v1645_v15  ;;  %v2859_v43 = vadd.f32 %v2858_v4, %v2574_v1  ;;  %v3726_v54 = vpop.f32.mrf.mxu1  ;;  %v3939_v8 = vld [vmem:[%s4935_s3 + $0x10] sm:$0xff]  }
 0x15e   :  { %v3601_v59 = vpop.f32.mrf.mxu0  ;;  %v2451_v46 = vmax.f32 %v1651_v50, 0.0  ;;  %v2577_v15 = vmax.f32 %v2155_v40, 0.0  ;;  %v2452_v14 = vmax.f32 %v1654_v18, 0.0  ;;  %3790 = vmatpush3.bf16.msra.mxu1 %v3939_v8  ;;  %v2166_v50 = vadd.f32 %v4711_v55, %v3726_v54 }
 0x15f   :  { %v2971_v28 = vunpack.c.l.b16 %v2939_v23  ;;  %v2714_v12 = vadd.f32 %v2713_v5, %v2449_v61  ;;  %v2450_v63 = vmax.f32 %v1646_v22, 0.0  ;;  %v2860_v56 = vadd.f32 %v2859_v43, %v2575_v7  ;;  %v2157_v17 = vpop.f32.mrf.mxu1  ;;  %3791 = vmatprep.subr.bf16.mxu1 %v3968_v29 }
 0x160   :  { %v1658_v38 = vpop.f32.mrf.mxu0  ;;  %v2158_v5 = vadd.f32 %v4711_v55, %v2157_v17  ;;  %v1667_v22 = vadd.f32 %v4711_v55, %v3601_v59  ;;  %v2580_v40 = vmax.f32 %v2166_v50, 0.0 }
 0x161   :  { %v4727_v47 = vsel %vm2978_vm2, %v2971_v28, %v2970_v25  ;;  %v2715_v39 = vadd.f32 %v2714_v12, %v2450_v63  ;;  %v1659_v48 = vadd.f32 %v4711_v55, %v1658_v38  ;;  %v2861_v61 = vadd.f32 %v2860_v56, %v2576_v37  ;;  %v3729_v41 = vpop.f32.mrf.mxu1 }
 0x162   :  { %v3602_v32 = vpop.f32.mrf.mxu0  ;;  %v2579_v28 = vmax.f32 %v2163_v21, 0.0  ;;  %v2578_v18 = vmax.f32 %v2158_v5, 0.0  ;;  %v2455_v59 = vmax.f32 %v1667_v22, 0.0  ;;  %v2179_v21 = vadd.f32 %v4711_v55, %v3729_v41 }
 0x163   :  { %v2716_v49 = vadd.f32 %v2715_v39, %v2451_v46  ;;  %v2453_v25 = vmax.f32 %v1659_v48, 0.0  ;;  %v2862_v12 = vadd.f32 %v2861_v61, %v2577_v15  ;;  %v1670_v30 = vadd.f32 %v4711_v55, %v3602_v32  ;;  %v2170_v37 = vpop.f32.mrf.mxu1 }
 0x164   :  { %v1661_v23 = vpop.f32.mrf.mxu0  ;;  %v2171_v39 = vadd.f32 %v4711_v55, %v2170_v37 }
 0x165   :  { %v2717_v4 = vadd.f32 %v2716_v49, %v2452_v14  ;;  %v1662_v7 = vadd.f32 %v4711_v55, %v1661_v23  ;;  %v2863_v46 = vadd.f32 %v2862_v12, %v2578_v18  ;;  %v3730_v8 = vpop.f32.mrf.mxu1  ;;  %v2456_v49 = vmax.f32 %v1670_v30, 0.0 }
 0x166   :  { %v3605_v1 = vpop.f32.mrf.mxu0  ;;  %v2581_v15 = vmax.f32 %v2171_v39, 0.0  ;;  %v2182_v50 = vadd.f32 %v4711_v55, %v3730_v8  ;;  %v2583_v18 = vmax.f32 %v2179_v21, 0.0 }
 0x167   :  { %v2718_v63 = vadd.f32 %v2717_v4, %v2453_v25  ;;  %v2454_v38 = vmax.f32 %v1662_v7, 0.0  ;;  %v2864_v14 = vadd.f32 %v2863_v46, %v2579_v28  ;;  %v2173_v32 = vpop.f32.mrf.mxu1  ;;  %v1683_v22 = vadd.f32 %v4711_v55, %v3605_v1 }
 0x168   :  { %v1674_v43 = vpop.f32.mrf.mxu0  ;;  %v2174_v5 = vadd.f32 %v4711_v55, %v2173_v32  ;;  %v2584_v46 = vmax.f32 %v2182_v50, 0.0 }
 0x169   :  { %v2719_v48 = vadd.f32 %v2718_v63, %v2454_v38  ;;  %v1675_v54 = vadd.f32 %v4711_v55, %v1674_v43  ;;  %v2865_v61 = vadd.f32 %v2864_v14, %v2580_v40  ;;  %v3733_v12 = vpop.f32.mrf.mxu1  ;;  %v2459_v1 = vmax.f32 %v1683_v22, 0.0 }
 0x16a   :  { %v3606_v56 = vpop.f32.mrf.mxu0  ;;  %v2582_v63 = vmax.f32 %v2174_v5, 0.0  ;;  %v2195_v21 = vadd.f32 %v4711_v55, %v3733_v12 }
 0x16b   :  { %v2720_v17 = vadd.f32 %v2719_v48, %v2455_v59  ;;  %v2457_v25 = vmax.f32 %v1675_v54, 0.0  ;;  %v2866_v41 = vadd.f32 %v2865_v61, %v2581_v15  ;;  %v1686_v38 = vadd.f32 %v4711_v55, %v3606_v56  ;;  %v2186_v43 = vpop.f32.mrf.mxu1 }
 0x16c   :  { %v1677_v23 = vpop.f32.mrf.mxu0  ;;  %v2187_v59 = vadd.f32 %v4711_v55, %v2186_v43 }
 0x16d   :  { %v2721_v4 = vadd.f32 %v2720_v17, %v2456_v49  ;;  %v1678_v7 = vadd.f32 %v4711_v55, %v1677_v23  ;;  %v2867_v39 = vadd.f32 %v2866_v41, %v2582_v63  ;;  %v3734_v8 = vpop.f32.mrf.mxu1  ;;  %v2460_v17 = vmax.f32 %v1686_v38, 0.0 }
 0x16e   :  { %v3609_v28 = vpop.f32.mrf.mxu0  ;;  %v2585_v15 = vmax.f32 %v2187_v59, 0.0  ;;  %v2198_v50 = vadd.f32 %v4711_v55, %v3734_v8  ;;  %v2587_v63 = vmax.f32 %v2195_v21, 0.0 }
 0x16f   :  { %v2722_v30 = vadd.f32 %v2721_v4, %v2457_v25  ;;  %v2458_v37 = vmax.f32 %v1678_v7, 0.0  ;;  %v2868_v49 = vadd.f32 %v2867_v39, %v2583_v18  ;;  %v2189_v56 = vpop.f32.mrf.mxu1  ;;  %v1699_v22 = vadd.f32 %v4711_v55, %v3609_v28 }
 0x170   :  { %v1690_v40 = vpop.f32.mrf.mxu0  ;;  %v2190_v5 = vadd.f32 %v4711_v55, %v2189_v56  ;;  %v2588_v39 = vmax.f32 %v2198_v50, 0.0 }
 0x171   :  { %v2723_v48 = vadd.f32 %v2722_v30, %v2458_v37  ;;  %v1691_v54 = vadd.f32 %v4711_v55, %v1690_v40  ;;  %v2869_v61 = vadd.f32 %v2868_v49, %v2584_v46  ;;  %v3737_v41 = vpop.f32.mrf.mxu1  ;;  %v2463_v28 = vmax.f32 %v1699_v22, 0.0 }
 0x172   :  { %v3610_v14 = vpop.f32.mrf.mxu0  ;;  %v2586_v30 = vmax.f32 %v2190_v5, 0.0  ;;  %v2211_v21 = vadd.f32 %v4711_v55, %v3737_v41 }
 0x173   :  { %v2724_v32 = vadd.f32 %v2723_v48, %v2459_v1  ;;  %v2461_v25 = vmax.f32 %v1691_v54, 0.0  ;;  %v2870_v12 = vadd.f32 %v2869_v61, %v2585_v15  ;;  %v1702_v37 = vadd.f32 %v4711_v55, %v3610_v14  ;;  %v2202_v40 = vpop.f32.mrf.mxu1 }
 0x174   :  { %v1693_v23 = vpop.f32.mrf.mxu0  ;;  %v2203_v1 = vadd.f32 %v4711_v55, %v2202_v40 }
 0x175   :  { %v2725_v4 = vadd.f32 %v2724_v32, %v2460_v17  ;;  %v1694_v7 = vadd.f32 %v4711_v55, %v1693_v23  ;;  %v2871_v59 = vadd.f32 %v2870_v12, %v2586_v30  ;;  %v3738_v8 = vpop.f32.mrf.mxu1  ;;  %v2464_v32 = vmax.f32 %v1702_v37, 0.0 }
 0x176   :  { %v3613_v18 = vpop.f32.mrf.mxu0  ;;  %v2589_v15 = vmax.f32 %v2203_v1, 0.0  ;;  %v2214_v50 = vadd.f32 %v4711_v55, %v3738_v8  ;;  %v2591_v30 = vmax.f32 %v2211_v21, 0.0 }
 0x177   :  { %v2726_v38 = vadd.f32 %v2725_v4, %v2461_v25  ;;  %v2462_v43 = vmax.f32 %v1694_v7, 0.0  ;;  %v2872_v17 = vadd.f32 %v2871_v59, %v2587_v63  ;;  %v2205_v14 = vpop.f32.mrf.mxu1  ;;  %v1715_v22 = vadd.f32 %v4711_v55, %v3613_v18 }
 0x178   :  { %v1706_v46 = vpop.f32.mrf.mxu0  ;;  %v2206_v5 = vadd.f32 %v4711_v55, %v2205_v14  ;;  %v2592_v18 = vmax.f32 %v2214_v50, 0.0 }
 0x179   :  { %v2727_v48 = vadd.f32 %v2726_v38, %v2462_v43  ;;  %v1707_v54 = vadd.f32 %v4711_v55, %v1706_v46  ;;  %v2873_v61 = vadd.f32 %v2872_v17, %v2588_v39  ;;  %v3741_v12 = vpop.f32.mrf.mxu1  ;;  %v3940_v39 = vld [vmem:[%s4935_s3 + $0x8] sm:$0xff]  }
 0x17a   :  { %v3614_v49 = vpop.f32.mrf.mxu0  ;;  %v2590_v38 = vmax.f32 %v2206_v5, 0.0  ;;  %3792 = vmatpush3.bf16.msra.mxu1 %v3940_v39 }
 0x17b   :  { %v2728_v56 = vadd.f32 %v2727_v48, %v2463_v28  ;;  %v2465_v25 = vmax.f32 %v1707_v54, 0.0  ;;  %v2874_v41 = vadd.f32 %v2873_v61, %v2589_v15  ;;  %v1718_v43 = vadd.f32 %v4711_v55, %v3614_v49  ;;  %v2218_v46 = vpop.f32.mrf.mxu1  ;;  %v3941_v49 = vld [vmem:[%s4935_s3] sm:$0xff]   ;;  %3793 = vmatprep.subr.bf16.mxu1 %v3968_v29 }
 0x17c   :  { %v1709_v23 = vpop.f32.mrf.mxu0  ;;  %v2219_v28 = vadd.f32 %v4711_v55, %v2218_v46  ;;  %v2467_v48 = vmax.f32 %v1715_v22, 0.0 }
 0x17d   :  { %v2729_v4 = vadd.f32 %v2728_v56, %v2464_v32  ;;  %v1710_v7 = vadd.f32 %v4711_v55, %v1709_v23  ;;  %v2875_v1 = vadd.f32 %v2874_v41, %v2590_v38  ;;  %v3742_v17 = vpop.f32.mrf.mxu1  ;;  %v2227_v32 = vadd.f32 %v4711_v55, %v3741_v12 }
 0x17e   :  { %v3617_v63 = vpop.f32.mrf.mxu0  ;;  %v2593_v56 = vmax.f32 %v2219_v28, 0.0  ;;  %v2468_v14 = vmax.f32 %v1718_v43, 0.0  ;;  %v2230_v22 = vadd.f32 %v4711_v55, %v3742_v17  ;;  %3794 = vmatpush3.bf16.msra.mxu1 %v3941_v49 }
 0x17f   :  { %v2730_v37 = vadd.f32 %v2729_v4, %v2465_v25  ;;  %v2466_v40 = vmax.f32 %v1710_v7, 0.0  ;;  %v2876_v15 = vadd.f32 %v2875_v1, %v2591_v30  ;;  %v2221_v61 = vpop.f32.mrf.mxu1  ;;  %v1731_v4 = vadd.f32 %v4711_v55, %v3617_v63 }
 0x180   :  { %v1722_v59 = vpop.f32.mrf.mxu0  ;;  %v2222_v25 = vadd.f32 %v4711_v55, %v2221_v61  ;;  %v2596_v1 = vmax.f32 %v2230_v22, 0.0 }
 0x181   :  { %v2731_v54 = vadd.f32 %v2730_v37, %v2466_v40  ;;  %v1723_v8 = vadd.f32 %v4711_v55, %v1722_v59  ;;  %v2877_v5 = vadd.f32 %v2876_v15, %v2592_v18  ;;  %v3745_v38 = vpop.f32.mrf.mxu1  ;;  %v2595_v37 = vmax.f32 %v2227_v32, 0.0 }
 0x182   :  { %v3618_v21 = vpop.f32.mrf.mxu0  ;;  %v2594_v43 = vmax.f32 %v2222_v25, 0.0  ;;  %v2243_v49 = vadd.f32 %v4711_v55, %v3745_v38 }
 0x183   :  { %v2732_v23 = vadd.f32 %v2731_v54, %v2467_v48  ;;  %v2469_v7 = vmax.f32 %v1723_v8, 0.0  ;;  %v2878_v29 = vadd.f32 %v2877_v5, %v2593_v56  ;;  %v1734_v46 = vadd.f32 %v4711_v55, %v3618_v21  ;;  %v2234_v59 = vpop.f32.mrf.mxu1 }
 0x184   :  { %v1725_v50 = vpop.f32.mrf.mxu0  ;;  %v2235_v63 = vadd.f32 %v4711_v55, %v2234_v59  ;;  %v2471_v48 = vmax.f32 %v1731_v4, 0.0  ;;  %v2599_v38 = vmax.f32 %v2243_v49, 0.0 }
 0x185   :  { %v2733_v41 = vadd.f32 %v2732_v23, %v2468_v14  ;;  %v1726_v30 = vadd.f32 %v4711_v55, %v1725_v50  ;;  %v2879_v28 = vadd.f32 %v2878_v29, %v2594_v43  ;;  %v3746_v8 = vpop.f32.mrf.mxu1  ;;  %v2472_v56 = vmax.f32 %v1734_v46, 0.0 }
 0x186   :  { %v3621_v12 = vpop.f32.mrf.mxu0  ;;  %v2597_v32 = vmax.f32 %v2235_v63, 0.0  ;;  %v2246_v5 = vadd.f32 %v4711_v55, %v3746_v8 }
 0x187   :  { %v2734_v40 = vadd.f32 %v2733_v41, %v2469_v7  ;;  %v2470_v39 = vmax.f32 %v1726_v30, 0.0  ;;  %v2880_v15 = vadd.f32 %v2879_v28, %v2595_v37  ;;  %v2237_v21 = vpop.f32.mrf.mxu1  ;;  %v1747_v4 = vadd.f32 %v4711_v55, %v3621_v12 }
 0x188   :  { %v1738_v18 = vpop.f32.mrf.mxu0  ;;  %v2238_v22 = vadd.f32 %v4711_v55, %v2237_v21 }
 0x189   :  { %v2735_v54 = vadd.f32 %v2734_v40, %v2470_v39  ;;  %v1739_v23 = vadd.f32 %v4711_v55, %v1738_v18  ;;  %v2881_v50 = vadd.f32 %v2880_v15, %v2596_v1  ;;  %v3749_v41 = vpop.f32.mrf.mxu1  ;;  %v2600_v1 = vmax.f32 %v2246_v5, 0.0 }
 0x18a   :  { %v3622_v17 = vpop.f32.mrf.mxu0  ;;  %v2598_v29 = vmax.f32 %v2238_v22, 0.0  ;;  %v2475_v12 = vmax.f32 %v1747_v4, 0.0 }
 0x18b   :  { %v2736_v14 = vadd.f32 %v2735_v54, %v2471_v48  ;;  %v2882_v37 = vadd.f32 %v2881_v50, %v2597_v32  ;;  %v2473_v40 = vmax.f32 %v1739_v23, 0.0  ;;  %v1750_v46 = vadd.f32 %v4711_v55, %v3622_v17  ;;  %v2250_v59 = vpop.f32.mrf.mxu1 }
 0x18c   :  { %v1741_v61 = vpop.f32.mrf.mxu0  ;;  %v2251_v63 = vadd.f32 %v4711_v55, %v2250_v59 }
 0x18d   :  { %v2737_v25 = vadd.f32 %v2736_v14, %v2472_v56  ;;  %v1742_v7 = vadd.f32 %v4711_v55, %v1741_v61  ;;  %v2883_v28 = vadd.f32 %v2882_v37, %v2598_v29  ;;  %v3750_v15 = vpop.f32.mrf.mxu1  ;;  %v2259_v56 = vadd.f32 %v4711_v55, %v3749_v41 }
 0x18e   :  { %v3625_v30 = vpop.f32.mrf.mxu0  ;;  %v2476_v23 = vmax.f32 %v1750_v46, 0.0  ;;  %v2601_v22 = vmax.f32 %v2251_v63, 0.0 }
 0x18f   :  { %v2738_v43 = vrot.slane %v2737_v25, 4  ;;  %v2474_v39 = vmax.f32 %v1742_v7, 0.0  ;;  %v2884_v32 = vadd.f32 %v2883_v28, %v2599_v38  ;;  %v1763_v21 = vadd.f32 %v4711_v55, %v3625_v30  ;;  %v2253_v61 = vpop.f32.mrf.mxu1 }
 0x190   :  { %v1754_v18 = vpop.f32.mrf.mxu0  ;;  %v2254_v4 = vadd.f32 %v4711_v55, %v2253_v61 }
 0x191   :  { %v2739_v48 = vadd.f32 %v2738_v43, %v2737_v25  ;;  %v2744_v54 = vadd.f32 %v2474_v39, %v2473_v40  ;;  %v1755_v8 = vadd.f32 %v4711_v55, %v1754_v18  ;;  %v4792_v5 = vadd.f32 %v2884_v32, %v2600_v1  ;;  %v3753_v41 = vpop.f32.mrf.mxu1 }
 0x192   :  { %v3626_v49 = vpop.f32.mrf.mxu0  ;;  %v2262_v25 = vadd.f32 %v4711_v55, %v3750_v15  ;;  %v2603_v40 = vmax.f32 %v2259_v56, 0.0  ;;  %v2602_v46 = vmax.f32 %v2254_v4, 0.0 }
 0x193   :  { %v2740_v14 = vrot.slane %v2739_v48, 2  ;;  %v2745_v17 = vadd.f32 %v2744_v54, %v2475_v12  ;;  %v2477_v37 = vmax.f32 %v1755_v8, 0.0  ;;  %v1766_v59 = vadd.f32 %v4711_v55, %v3626_v49  ;;  %v2266_v1 = vpop.f32.mrf.mxu1 }
 0x194   :  { %v1757_v50 = vpop.f32.mrf.mxu0  ;;  %v2604_v63 = vmax.f32 %v2262_v25, 0.0  ;;  %v2892_v12 = vadd.f32 %v2602_v46, %v2601_v22  ;;  %v2267_v54 = vadd.f32 %v4711_v55, %v2266_v1  ;;  %v2479_v8 = vmax.f32 %v1763_v21, 0.0 }
 0x195   :  { %v2741_v7 = vadd.f32 %v2740_v14, %v2739_v48  ;;  %v2746_v29 = vadd.f32 %v2745_v17, %v2476_v23  ;;  %v1758_v38 = vadd.f32 %v4711_v55, %v1757_v50  ;;  %v3754_v14 = vpop.f32.mrf.mxu1  ;;  %v2275_v17 = vadd.f32 %v4711_v55, %v3753_v41 }
 0x196   :  { %v3629_v43 = vpop.f32.mrf.mxu0  ;;  %v2893_v56 = vadd.f32 %v2892_v12, %v2603_v40  ;;  %v2605_v61 = vmax.f32 %v2267_v54, 0.0  ;;  %v2480_v49 = vmax.f32 %v1766_v59, 0.0 }
 0x197   :  { %v2742_v39 = vrot.slane %v2741_v7, 1  ;;  %v2747_v30 = vadd.f32 %v2746_v29, %v2477_v37  ;;  %v2478_v18 = vmax.f32 %v1758_v38, 0.0  ;;  %v2269_v37 = vpop.f32.mrf.mxu1  ;;  %v1779_v25 = vadd.f32 %v4711_v55, %v3629_v43 }
 0x198   :  { %v1770_v28 = vpop.f32.mrf.mxu0  ;;  %v2894_v29 = vadd.f32 %v2893_v56, %v2604_v63  ;;  %v2270_v21 = vadd.f32 %v4711_v55, %v2269_v37 }
 0x199   :  { %v2743_v48 = vadd.f32 %v2742_v39, %v2741_v7  ;;  %v2748_v15 = vadd.f32 %v2747_v30, %v2478_v18  ;;  %v1771_v32 = vadd.f32 %v4711_v55, %v1770_v28  ;;  %v2278_v7 = vadd.f32 %v4711_v55, %v3754_v14  ;;  %v3757_v30 = vpop.f32.mrf.mxu1 }
 0x19a   :  { %v3630_v23 = vpop.f32.mrf.mxu0  ;;  %v2607_v18 = vmax.f32 %v2275_v17, 0.0  ;;  %v2895_v59 = vadd.f32 %v2894_v29, %v2605_v61  ;;  %v2606_v1 = vmax.f32 %v2270_v21, 0.0  ;;  %v2483_v56 = vmax.f32 %v1779_v25, 0.0 }
 0x19b   :  { %v2931_v50 = vmul.f32 0.00390625, %v2743_v48  ;;  %v2749_v4 = vadd.f32 %v2748_v15, %v2479_v8  ;;  %v2481_v46 = vmax.f32 %v1771_v32, 0.0  ;;  %v1782_v43 = vadd.f32 %v4711_v55, %v3630_v23  ;;  %v2282_v54 = vpop.f32.mrf.mxu1 }
 0x19c   :  { %v1773_v22 = vpop.f32.mrf.mxu0  ;;  %v2608_v8 = vmax.f32 %v2278_v7, 0.0  ;;  %v2896_v15 = vadd.f32 %v2895_v59, %v2606_v1  ;;  %v2283_v32 = vadd.f32 %v4711_v55, %v2282_v54  ;;  %v2291_v37 = vadd.f32 %v4711_v55, %v3757_v30 }
 0x19d   :  { %v2940_v38 = vpack.c.bf16 %v2931_v50, %v2931_v50  ;;  %v2750_v39 = vadd.f32 %v2749_v4, %v2480_v49  ;;  %v1774_v40 = vadd.f32 %v4711_v55, %v1773_v22  ;;  %v3758_v61 = vpop.f32.mrf.mxu1  ;;  %v2484_v22 = vmax.f32 %v1782_v43, 0.0 }
 0x19e   :  { %v3633_v41 = vpop.f32.mrf.mxu0  ;;  %v2897_v4 = vadd.f32 %v2896_v15, %v2607_v18  ;;  %v2609_v23 = vmax.f32 %v2283_v32, 0.0  ;;  %v2294_v30 = vadd.f32 %v4711_v55, %v3758_v61 }
 0x19f   :  { %v2972_v28 = vunpack.c.l.b16 %v2940_v38  ;;  %v2751_v12 = vadd.f32 %v2750_v39, %v2481_v46  ;;  %v2482_v63 = vmax.f32 %v1774_v40, 0.0  ;;  %v2285_v21 = vpop.f32.mrf.mxu1 }
 0x1a0   :  { %v1786_v48 = vpop.f32.mrf.mxu0  ;;  %v2898_v38 = vadd.f32 %v2897_v4, %v2608_v8  ;;  %v2286_v46 = vadd.f32 %v4711_v55, %v2285_v21  ;;  %v2612_v4 = vmax.f32 %v2294_v30, 0.0 }
 0x1a1   :  { %v4808_v14 = vsel %vm2980_vm4, %v2972_v28, %v4727_v47  ;;  %v2752_v50 = vadd.f32 %v2751_v12, %v2482_v63  ;;  %v1787_v17 = vadd.f32 %v4711_v55, %v1786_v48  ;;  %v1795_v47 = vadd.f32 %v4711_v55, %v3633_v41  ;;  %v3761_v59 = vpop.f32.mrf.mxu1 }
 0x1a2   :  { %v3634_v49 = vpop.f32.mrf.mxu0  ;;  %v2611_v28 = vmax.f32 %v2291_v37, 0.0  ;;  %v2899_v18 = vadd.f32 %v2898_v38, %v2609_v23  ;;  %v2610_v12 = vmax.f32 %v2286_v46, 0.0 }
 0x1a3   :  { %v2753_v29 = vadd.f32 %v2752_v50, %v2483_v56  ;;  %v2485_v39 = vmax.f32 %v1787_v17, 0.0  ;;  %v1798_v63 = vadd.f32 %v4711_v55, %v3634_v49  ;;  %v2298_v48 = vpop.f32.mrf.mxu1  ;;  %v2487_v32 = vmax.f32 %v1795_v47, 0.0 }
 0x1a4   :  { %v1789_v7 = vpop.f32.mrf.mxu0  ;;  %v2900_v15 = vadd.f32 %v2899_v18, %v2610_v12  ;;  %v2299_v37 = vadd.f32 %v4711_v55, %v2298_v48 }
 0x1a5   :  { %v2754_v25 = vadd.f32 %v2753_v29, %v2484_v22  ;;  %v1790_v40 = vadd.f32 %v4711_v55, %v1789_v7  ;;  %v3762_v50 = vpop.f32.mrf.mxu1  ;;  %v2488_v23 = vmax.f32 %v1798_v63, 0.0 }
 0x1a6   :  { %v3637_v1 = vpop.f32.mrf.mxu0  ;;  %v2901_v22 = vadd.f32 %v2900_v15, %v2611_v28 }
 0x1a7   :  { %v2755_v43 = vadd.f32 %v2754_v25, %v2485_v39  ;;  %v2486_v54 = vmax.f32 %v1790_v40, 0.0  ;;  %v2301_v29 = vpop.f32.mrf.mxu1  ;;  %v1811_v49 = vadd.f32 %v4711_v55, %v3637_v1  ;;  %v2613_v39 = vmax.f32 %v2299_v37, 0.0 }
 0x1a8   :  { %v1802_v8 = vpop.f32.mrf.mxu0  ;;  %v2902_v25 = vadd.f32 %v2901_v22, %v2612_v4  ;;  %v2302_v40 = vadd.f32 %v4711_v55, %v2301_v29 }
 0x1a9   :  { %v2756_v41 = vadd.f32 %v2755_v43, %v2486_v54  ;;  %v1803_v56 = vadd.f32 %v4711_v55, %v1802_v8  ;;  %v3765_v12 = vpop.f32.mrf.mxu1  ;;  %v2491_v63 = vmax.f32 %v1811_v49, 0.0  ;;  %v2307_v8 = vadd.f32 %v4711_v55, %v3761_v59 }
 0x1aa   :  { %v3638_v17 = vpop.f32.mrf.mxu0  ;;  %v2903_v15 = vadd.f32 %v2902_v25, %v2613_v39  ;;  %v2310_v49 = vadd.f32 %v4711_v55, %v3762_v50 }
 0x1ab   :  { %v2757_v61 = vadd.f32 %v2756_v41, %v2487_v32  ;;  %v2489_v7 = vmax.f32 %v1803_v56, 0.0  ;;  %v1814_v28 = vadd.f32 %v4711_v55, %v3638_v17  ;;  %v2614_v32 = vmax.f32 %v2302_v40, 0.0  ;;  %v2314_v4 = vpop.f32.mrf.mxu1 }
 0x1ac   :  { %v1805_v21 = vpop.f32.mrf.mxu0 }
 0x1ad   :  { %v2758_v38 = vadd.f32 %v2757_v61, %v2488_v23  ;;  %v1806_v46 = vadd.f32 %v4711_v55, %v1805_v21  ;;  %v2492_v41 = vmax.f32 %v1814_v28, 0.0  ;;  %v2615_v21 = vmax.f32 %v2307_v8, 0.0  ;;  %v3766_v39 = vpop.f32.mrf.mxu1 }
 0x1ae   :  { %v3641_v47 = vpop.f32.mrf.mxu0 }
 0x1af   :  { %v2759_v18 = vadd.f32 %v2758_v38, %v2489_v7  ;;  %v2490_v30 = vmax.f32 %v1806_v46, 0.0  ;;  %v1827_v37 = vadd.f32 %v4711_v55, %v3641_v47  ;;  %v2904_v7 = vadd.f32 %v2903_v15, %v2614_v32  ;;  %v2317_v8 = vpop.f32.mrf.mxu1 }
 0x1b0   :  { %v1818_v43 = vpop.f32.mrf.mxu0 }
 0x1b1   :  { %v2760_v54 = vadd.f32 %v2759_v18, %v2490_v30  ;;  %v1819_v48 = vadd.f32 %v4711_v55, %v1818_v43  ;;  %v2495_v40 = vmax.f32 %v1827_v37, 0.0  ;;  %v2616_v30 = vmax.f32 %v2310_v49, 0.0 }
 0x1b2   :  { %v3642_v1 = vpop.f32.mrf.mxu0  ;;  %v2905_v43 = vadd.f32 %v2904_v7, %v2615_v21 }
 0x1b3   :  { %v2761_v56 = vadd.f32 %v2760_v54, %v2491_v63  ;;  %v2493_v23 = vmax.f32 %v1819_v48, 0.0  ;;  %v1830_v59 = vadd.f32 %v4711_v55, %v3642_v1  ;;  %v2315_v63 = vadd.f32 %v4711_v55, %v2314_v4  ;;  %v3769_v4 = vpop.f32.mrf.mxu1 }
 0x1b4   :  { %v1821_v22 = vpop.f32.mrf.mxu0  ;;  %v2906_v37 = vadd.f32 %v2905_v43, %v2616_v30 }
 0x1b5   :  { %v2762_v17 = vadd.f32 %v2761_v56, %v2492_v41  ;;  %v1822_v61 = vadd.f32 %v4711_v55, %v1821_v22  ;;  %v2496_v54 = vmax.f32 %v1830_v59, 0.0  ;;  %v2617_v22 = vmax.f32 %v2315_v63, 0.0  ;;  %v2330_v30 = vpop.f32.mrf.mxu1 }
 0x1b6   :  { %v3645_v29 = vpop.f32.mrf.mxu0 }
 0x1b7   :  { %v2763_v38 = vadd.f32 %v2762_v17, %v2493_v23  ;;  %v2494_v46 = vmax.f32 %v1822_v61, 0.0  ;;  %v1843_v15 = vadd.f32 %v4711_v55, %v3645_v29  ;;  %v2318_v23 = vadd.f32 %v4711_v55, %v2317_v8 }
 0x1b8   :  { %v1834_v25 = vpop.f32.mrf.mxu0 }
 0x1b9   :  { %v2764_v18 = vadd.f32 %v2763_v38, %v2494_v46  ;;  %v1835_v28 = vadd.f32 %v4711_v55, %v1834_v25  ;;  %v2499_v7 = vmax.f32 %v1843_v15, 0.0  ;;  %v2323_v46 = vadd.f32 %v4711_v55, %v3765_v12 }
 0x1ba   :  { %v3646_v47 = vpop.f32.mrf.mxu0  ;;  %v2907_v25 = vadd.f32 %v2906_v37, %v2617_v22  ;;  %v2326_v15 = vadd.f32 %v4711_v55, %v3766_v39  ;;  %v3770_v22 = vpop.f32.mrf.mxu1 }
 0x1bb   :  { %v2765_v48 = vadd.f32 %v2764_v18, %v2495_v40  ;;  %v2497_v32 = vmax.f32 %v1835_v28, 0.0  ;;  %v1846_v61 = vadd.f32 %v4711_v55, %v3646_v47  ;;  %v2618_v40 = vmax.f32 %v2318_v23, 0.0 }
 0x1bc   :  { %v1837_v50 = vpop.f32.mrf.mxu0 }
 0x1bd   :  { %v2766_v1 = vadd.f32 %v2765_v48, %v2496_v54  ;;  %v1838_v41 = vadd.f32 %v4711_v55, %v1837_v50  ;;  %v2500_v18 = vmax.f32 %v1846_v61, 0.0  ;;  %v2619_v50 = vmax.f32 %v2323_v46, 0.0  ;;  %v2333_v46 = vpop.f32.mrf.mxu1 }
 0x1be   :  { %v3649_v56 = vpop.f32.mrf.mxu0 }
 0x1bf   :  { %v2767_v17 = vadd.f32 %v2766_v1, %v2497_v32  ;;  %v2498_v21 = vmax.f32 %v1838_v41, 0.0  ;;  %v1859_v63 = vadd.f32 %v4711_v55, %v3649_v56  ;;  %v2908_v32 = vadd.f32 %v2907_v25, %v2618_v40 }
 0x1c0   :  { %v1850_v49 = vpop.f32.mrf.mxu0 }
 0x1c1   :  { %v2768_v38 = vadd.f32 %v2767_v17, %v2498_v21  ;;  %v1851_v59 = vadd.f32 %v4711_v55, %v1850_v49  ;;  %v2503_v23 = vmax.f32 %v1859_v63, 0.0  ;;  %v2620_v21 = vmax.f32 %v2326_v15, 0.0 }
 0x1c2   :  { %v3650_v29 = vpop.f32.mrf.mxu0  ;;  %v2909_v56 = vadd.f32 %v2908_v32, %v2619_v50  ;;  %v2331_v49 = vadd.f32 %v4711_v55, %v2330_v30  ;;  %v1883_v50 = vadd.f32 %v4711_v55, %v4448_v11 }
 0x1c3   :  { %v2769_v28 = vadd.f32 %v2768_v38, %v2499_v7  ;;  %v2501_v54 = vmax.f32 %v1851_v59, 0.0  ;;  %v1862_v12 = vadd.f32 %v4711_v55, %v3650_v29 }
 0x1c4   :  { %v1853_v43 = vpop.f32.mrf.mxu0 }
 0x1c5   :  { %v2770_v47 = vadd.f32 %v2769_v28, %v2500_v18  ;;  %v1854_v48 = vadd.f32 %v4711_v55, %v1853_v43  ;;  %v2504_v7 = vmax.f32 %v1862_v12, 0.0  ;;  %v2621_v18 = vmax.f32 %v2331_v49, 0.0 }
 0x1c6   :  { %v3653_v8 = vpop.f32.mrf.mxu0  ;;  %v2910_v28 = vadd.f32 %v2909_v56, %v2620_v21  ;;  %v2334_v43 = vadd.f32 %v4711_v55, %v2333_v46  ;;  %v2509_v49 = vmax.f32 %v1883_v50, 0.0 }
 0x1c7   :  { %v2771_v1 = vadd.f32 %v2770_v47, %v2501_v54  ;;  %v2502_v41 = vmax.f32 %v1854_v48, 0.0  ;;  %v1875_v40 = vadd.f32 %v4711_v55, %v3653_v8  ;;  %v3773_v48 = vpop.f32.mrf.mxu1  ;;  %v2339_v8 = vadd.f32 %v4711_v55, %v3769_v4 }
 0x1c8   :  { %v1866_v37 = vpop.f32.mrf.mxu0  ;;  %v2911_v12 = vadd.f32 %v2910_v28, %v2621_v18  ;;  %v1894_v4 = vadd.f32 %v4711_v55, %v4451_v16  ;;  %v1899_v18 = vadd.f32 %v4711_v55, %v4476_v36 }
 0x1c9   :  { %v2772_v17 = vadd.f32 %v2771_v1, %v2502_v41  ;;  %v1867_v59 = vadd.f32 %v4711_v55, %v1866_v37  ;;  %v2507_v32 = vmax.f32 %v1875_v40, 0.0  ;;  %v2622_v41 = vmax.f32 %v2334_v43, 0.0  ;;  %v2346_v56 = vpop.f32.mrf.mxu1 }
 0x1ca   :  { %v3654_v61 = vpop.f32.mrf.mxu0  ;;  %v1886_v37 = vadd.f32 %v4711_v55, %v4465_v24  ;;  %v2512_v16 = vmax.f32 %v1894_v4, 0.0 }
 0x1cb   :  { %v2773_v38 = vadd.f32 %v2772_v17, %v2503_v23  ;;  %v2505_v54 = vmax.f32 %v1867_v59, 0.0  ;;  %v1878_v47 = vadd.f32 %v4711_v55, %v3654_v61  ;;  %v1891_v61 = vadd.f32 %v4711_v55, %v4441_v6  ;;  %v3774_v40 = vpop.f32.mrf.mxu1 }
 0x1cc   :  { %v1869_v39 = vpop.f32.mrf.mxu0  ;;  %v2342_v59 = vadd.f32 %v4711_v55, %v3770_v22  ;;  %v2912_v46 = vadd.f32 %v2911_v12, %v2622_v41  ;;  %v4862_v22 = vld [vmem:[%s4934_s2] ss:$0 sm:$0xff] }
 0x1cd   :  { %v2774_v25 = vadd.f32 %v2773_v38, %v2504_v7  ;;  %v1870_v29 = vadd.f32 %v4711_v55, %v1869_v39  ;;  %v2508_v17 = vmax.f32 %v1878_v47, 0.0  ;;  %v2623_v38 = vmax.f32 %v2339_v8, 0.0 }
 0x1ce   :  { %v2510_v39 = vmax.f32 %v1886_v37, 0.0  ;;  %v2624_v43 = vmax.f32 %v2342_v59, 0.0  ;;  %v1902_v47 = vadd.f32 %v4862_v22, %v4496_v51  ;;  %v1907_v36 = vadd.f32 %v4862_v22, %v4469_v31 }
 0x1cf   :  { %v2775_v63 = vrot.slane %v2774_v25, 4  ;;  %v2506_v30 = vmax.f32 %v1870_v29, 0.0  ;;  %v2511_v29 = vmax.f32 %v1891_v61, 0.0  ;;  %v2513_v55 = vmax.f32 %v1899_v18, 0.0 }
 0x1d0   :  { %v1910_v37 = vadd.f32 %v4862_v22, %v4479_v42  ;;  %v1915_v61 = vadd.f32 %v4862_v22, %v4508_v62  ;;  %v1918_v42 = vadd.f32 %v4862_v22, %v4525_v13  ;;  %v1931_v13 = vadd.f32 %v4862_v22, %v4536_v26 }
 0x1d1   :  { %v2776_v15 = vadd.f32 %v2775_v63, %v2774_v25  ;;  %v2781_v1 = vadd.f32 %v2506_v30, %v2505_v54  ;;  %v2913_v63 = vadd.f32 %v2912_v46, %v2623_v38  ;;  %v2347_v54 = vadd.f32 %v4862_v22, %v2346_v56 }
 0x1d2   :  { %v2515_v56 = vmax.f32 %v1907_v36, 0.0  ;;  %v2516_v59 = vmax.f32 %v1910_v37, 0.0  ;;  %v2518_v18 = vmax.f32 %v1918_v42, 0.0 }
 0x1d3   :  { %v2777_v23 = vrot.slane %v2776_v15, 2  ;;  %v2782_v21 = vadd.f32 %v2781_v1, %v2507_v32  ;;  %v2625_v8 = vmax.f32 %v2347_v54, 0.0  ;;  %v2914_v12 = vadd.f32 %v2913_v63, %v2624_v43 }
 0x1d5   :  { %v2778_v7 = vadd.f32 %v2777_v23, %v2776_v15  ;;  %v2783_v11 = vadd.f32 %v2782_v21, %v2508_v17  ;;  %v2349_v15 = vpop.f32.mrf.mxu1  ;;  %v2514_v23 = vmax.f32 %v1902_v47, 0.0 }
 0x1d6   :  { %v2350_v41 = vadd.f32 %v4862_v22, %v2349_v15  ;;  %v2521_v15 = vmax.f32 %v1931_v13, 0.0  ;;  %v1979_v13 = vadd.f32 %v4862_v22, %v4616_v60  ;;  %v1990_v60 = vadd.f32 %v4862_v22, %v4618_v2 }
 0x1d7   :  { %v2779_v25 = vrot.slane %v2778_v7, 1  ;;  %v2784_v24 = vadd.f32 %v2783_v11, %v2509_v49  ;;  %v3777_v21 = vpop.f32.mrf.mxu1  ;;  %v2915_v11 = vadd.f32 %v2914_v12, %v2625_v8 }
 0x1d8   :  { %v2626_v38 = vmax.f32 %v2350_v41, 0.0 }
 0x1d9   :  { %v2780_v28 = vadd.f32 %v2779_v25, %v2778_v7  ;;  %v2785_v6 = vadd.f32 %v2784_v24, %v2510_v39  ;;  %v2355_v7 = vadd.f32 %v4862_v22, %v3773_v48  ;;  %v2362_v4 = vpop.f32.mrf.mxu1  ;;  %v1923_v39 = vadd.f32 %v4862_v22, %v4501_v57 }
 0x1da   :  { %v2517_v25 = vmax.f32 %v1915_v61, 0.0  ;;  %v1926_v48 = vadd.f32 %v4862_v22, %v4511_v3  ;;  %v2363_v57 = vadd.f32 %v4862_v22, %v2362_v4  ;;  %v1939_v3 = vadd.f32 %v4862_v22, %v4529_v20 }
 0x1db   :  { %v2932_v30 = vmul.f32 0.00390625, %v2780_v28  ;;  %v2786_v50 = vadd.f32 %v2785_v6, %v2511_v29  ;;  %v2627_v62 = vmax.f32 %v2355_v7, 0.0  ;;  %v2916_v29 = vadd.f32 %v2915_v11, %v2626_v38  ;;  %v3778_v6 = vpop.f32.mrf.mxu1 }
 0x1dc   :  { %v2519_v43 = vmax.f32 %v1923_v39, 0.0  ;;  %v2520_v47 = vmax.f32 %v1926_v48, 0.0  ;;  %v2523_v41 = vmax.f32 %v1939_v3, 0.0  ;;  %v2374_v38 = vadd.f32 %v4862_v22, %v3778_v6 }
 0x1dd   :  { %v2941_v32 = vpack.c.bf16 %v2932_v30, %v2932_v30  ;;  %v2787_v1 = vadd.f32 %v2786_v50, %v2512_v16  ;;  %v2917_v16 = vadd.f32 %v2916_v29, %v2627_v62  ;;  %v2365_v50 = vpop.f32.mrf.mxu1  ;;  %v1963_v4 = vadd.f32 %v4862_v22, %v4596_v27 }
 0x1de   :  { %v2366_v26 = vadd.f32 %v4862_v22, %v2365_v50  ;;  %v2632_v39 = vmax.f32 %v2374_v38, 0.0  ;;  %v2849_v27 = vrot.slane %v4706_v34, 4 }
 0x1df   :  { %v2973_v17 = vunpack.c.l.b16 %v2941_v32  ;;  %v2788_v51 = vadd.f32 %v2787_v1, %v2513_v55  ;;  %v2629_v55 = vmax.f32 %v2363_v57, 0.0  ;;  %v1942_v1 = vadd.f32 %v4862_v22, %v4539_v33 }
 0x1e0   :  { %v2630_v20 = vmax.f32 %v2366_v26, 0.0  ;;  %v2529_v29 = vmax.f32 %v1963_v4, 0.0 }
 0x1e1   :  { %v4875_v31 = vsel %vm2982_vm5, %v2973_v17, %v4808_v14  ;;  %v2789_v49 = vadd.f32 %v2788_v51, %v2514_v23  ;;  %v2358_v14 = vadd.f32 %v4862_v22, %v3774_v40  ;;  %v1934_v40 = vadd.f32 %v4862_v22, %v4553_v44 }
 0x1e2   :  { %v1947_v44 = vadd.f32 %v4862_v22, %v4567_v58  ;;  %v2371_v23 = vadd.f32 %v4862_v22, %v3777_v21  ;;  %v2524_v51 = vmax.f32 %v1942_v1, 0.0  ;;  %v1958_v58 = vadd.f32 %v4862_v22, %v4571_v0 }
 0x1e3   :  { %v2790_v46 = vadd.f32 %v2789_v49, %v2515_v56  ;;  %v2628_v54 = vmax.f32 %v2358_v14, 0.0  ;;  %v2522_v8 = vmax.f32 %v1934_v40, 0.0  ;;  %v1950_v56 = vadd.f32 %v4862_v22, %v4585_v10 }
 0x1e4   :  { %v1955_v49 = vadd.f32 %v4862_v22, %v4560_v52  ;;  %v2525_v33 = vmax.f32 %v1947_v44, 0.0  ;;  %v2631_v11 = vmax.f32 %v2371_v23, 0.0  ;;  %v1966_v52 = vadd.f32 %v4862_v22, %v4607_v45 }
 0x1e5   :  { %v2791_v24 = vadd.f32 %v2790_v46, %v2516_v59  ;;  %v2918_v32 = vadd.f32 %v2917_v16, %v2628_v54  ;;  %v2526_v21 = vmax.f32 %v1950_v56, 0.0  ;;  %v1971_v14 = vadd.f32 %v4862_v22, %v4589_v19 }
 0x1e6   :  { %v2527_v46 = vmax.f32 %v1955_v49, 0.0  ;;  %v2886_v45 = vrot.slane %v4792_v5, 4  ;;  %v1982_v19 = vadd.f32 %v4862_v22, %v4621_v9  ;;  %v2533_v40 = vmax.f32 %v1979_v13, 0.0 }
 0x1e7   :  { %v2792_v28 = vadd.f32 %v2791_v24, %v2517_v25  ;;  %v2919_v17 = vadd.f32 %v2918_v32, %v2629_v55  ;;  %v2528_v24 = vmax.f32 %v1958_v58, 0.0 }
 0x1e9   :  { %v2793_v63 = vadd.f32 %v2792_v28, %v2518_v18  ;;  %v2920_v59 = vadd.f32 %v2919_v17, %v2630_v20  ;;  %v1974_v18 = vadd.f32 %v4862_v22, %v4599_v35  ;;  %v2530_v28 = vmax.f32 %v1966_v52, 0.0 }
 0x1ea   :  { %v1987_v35 = vadd.f32 %v4862_v22, %v4611_v53 }
 0x1eb   :  { %v2794_v30 = vadd.f32 %v2793_v63, %v2519_v43  ;;  %v2921_v25 = vadd.f32 %v2920_v59, %v2631_v11  ;;  %v2531_v43 = vmax.f32 %v1971_v14, 0.0  ;;  %v2532_v16 = vmax.f32 %v1974_v18, 0.0 }
 0x1ec   :  { %v2535_v32 = vmax.f32 %v1987_v35, 0.0 }
 0x1ed   :  { %v2795_v36 = vadd.f32 %v2794_v30, %v2520_v47  ;;  %v2922_v0 = vadd.f32 %v2921_v25, %v2632_v39  ;;  %v2850_v47 = vadd.f32 %v2849_v27, %v4706_v34  ;;  %v2887_v30 = vadd.f32 %v2886_v45, %v4792_v5 }
 0x1ef   :  { %v2796_v12 = vadd.f32 %v2795_v36, %v2521_v15  ;;  %v2923_v54 = vrot.slane %v2922_v0, 4  ;;  %v2534_v15 = vmax.f32 %v1982_v19, 0.0  ;;  %v2851_v55 = vrot.slane %v2850_v47, 2 }
 0x1f0   :  { %v2888_v26 = vrot.slane %v2887_v30, 2 }
 0x1f1   :  { %v2797_v37 = vadd.f32 %v2796_v12, %v2522_v8  ;;  %v2924_v3 = vadd.f32 %v2923_v54, %v2922_v0  ;;  %v2536_v8 = vmax.f32 %v1990_v60, 0.0  ;;  %v2852_v12 = vadd.f32 %v2851_v55, %v2850_v47 }
 0x1f3   :  { %v2798_v61 = vadd.f32 %v2797_v37, %v2523_v41  ;;  %v2925_v1 = vrot.slane %v2924_v3, 2  ;;  %v2889_v41 = vadd.f32 %v2888_v26, %v2887_v30  ;;  %v2853_v5 = vrot.slane %v2852_v12, 1 }
 0x1f5   :  { %v2799_v7 = vadd.f32 %v2798_v61, %v2524_v51  ;;  %v2926_v44 = vadd.f32 %v2925_v1, %v2924_v3  ;;  %v2890_v23 = vrot.slane %v2889_v41, 1  ;;  %v2854_v2 = vadd.f32 %v2853_v5, %v2852_v12 }
 0x1f7   :  { %v2800_v42 = vadd.f32 %v2799_v7, %v2525_v33  ;;  %v2927_v20 = vrot.slane %v2926_v44, 1  ;;  %v2891_v22 = vadd.f32 %v2890_v23, %v2889_v41  ;;  %v2934_v33 = vmul.f32 0.00390625, %v2854_v2 }
 0x1f9   :  { %v2801_v10 = vadd.f32 %v2800_v42, %v2526_v21  ;;  %v2928_v61 = vadd.f32 %v2927_v20, %v2926_v44  ;;  %v2935_v7 = vmul.f32 0.00390625, %v2891_v22  ;;  %v2943_v58 = vpack.c.bf16 %v2934_v33, %v2934_v33 }
 0x1fb   :  { %v2802_v62 = vadd.f32 %v2801_v10, %v2527_v46  ;;  %v2936_v38 = vmul.f32 0.00390625, %v2928_v61  ;;  %v2944_v21 = vpack.c.bf16 %v2935_v7, %v2935_v7  ;;  %v2975_v10 = vunpack.c.l.b16 %v2943_v58 }
 0x1fd   :  { %v2803_v48 = vadd.f32 %v2802_v62, %v2528_v24  ;;  %v2945_v46 = vpack.c.bf16 %v2936_v38, %v2936_v38  ;;  %v2976_v39 = vunpack.c.l.b16 %v2944_v21 }
 0x1ff   :  { %v2804_v6 = vadd.f32 %v2803_v48, %v2529_v29  ;;  %v2977_v24 = vunpack.c.l.b16 %v2945_v46  ;;  %v3382_v48 = vld [vmem:[%s4936_s4] ss:$0 sm:$0xff] }
 0x201   :  { %v2805_v63 = vadd.f32 %v2804_v6, %v2530_v28 }
 0x203   :  { %v2806_v57 = vadd.f32 %v2805_v63, %v2531_v43 }
 0x205   :  { %v2807_v50 = vadd.f32 %v2806_v57, %v2532_v16 }
 0x207   :  { %v2808_v36 = vadd.f32 %v2807_v50, %v2533_v40 }
 0x209   :  { %v2809_v9 = vadd.f32 %v2808_v36, %v2534_v15 }
 0x20b   :  { %v2810_v34 = vadd.f32 %v2809_v9, %v2535_v32 }
 0x20d   :  { %v2811_v53 = vadd.f32 %v2810_v34, %v2536_v8 }
 0x20f   :  { %v2812_v37 = vrot.slane %v2811_v53, 4 }
 0x211   :  { %v2813_v17 = vadd.f32 %v2812_v37, %v2811_v53 }
 0x213   :  { %v2814_v51 = vrot.slane %v2813_v17, 2 }
 0x215   :  { %v2815_v56 = vadd.f32 %v2814_v51, %v2813_v17 }
 0x217   :  { %v2816_v49 = vrot.slane %v2815_v56, 1 }
 0x219   :  { %v2817_v11 = vadd.f32 %v2816_v49, %v2815_v56 }
 0x21b   :  { %v2933_v59 = vmul.f32 0.00390625, %v2817_v11 }
 0x21d   :  { %v2942_v42 = vpack.c.bf16 %v2933_v59, %v2933_v59 }
 0x21f   :  { %v2974_v4 = vunpack.c.l.b16 %v2942_v42 }
 0x221   :  { %v2985_v25 = vsel %vm2984_vm6, %v2974_v4, %v4875_v31 }
 0x222   :  { %v2987_v52 = vsel %vm2986_vm7, %v2975_v10, %v2985_v25 }
 0x223   :  { %v2989_v62 = vsel %vm2988_vm8, %v2976_v39, %v2987_v52 }
 0x224   :  { %v2991_v14 = vsel %vm2990_vm9, %v2977_v24, %v2989_v62 }
 0x225   :  { %v2992_v29 = vpack.c.b16 %v2991_v14, %v2991_v14 }
 0x227   :  { %3796 = vmatmul.mubr.bf16.vlgmr.msra.gmra.mxu1 %v2992_v29 }
 0x2e7   :  { %v3076_v0 = vpop.f32.mrf.mxu1 }
 0x2e8   :  { %v3095_v18 = vadd.f32 %v3382_v48, %v3076_v0 }
 0x2e9   :  { %v3797_v28 = vpop.f32.mrf.mxu1 }
 0x2ea   :  { %v3096_v6 = vmul.f32 %v3095_v18, %v3095_v18 }
 0x2eb   :  { %v3079_v27 = vpop.f32.mrf.mxu1 }
 0x2ec   :  { %3097 = vadd.xlane.f32.xlu0 %v3096_v6 }
 0x2ed   :  { %v3798_v43 = vpop.f32.mrf.mxu1 }
 0x375   :  { %v3098_v13 = vpop.xlane.xlu0 %3097 }
 0x376   :  { %v3099_v31 = vmax.f32 %v3098_v13, 1e-24 }
 0x378   :  { %3942 = vrsqrt.f32 %v3099_v31 }
 0x385   :  { %v3943_v45 = vpop.eup %3942 }
 0x386   :  { %v3101_v63 = vmul.f32 %v3943_v45, %v3095_v18 }
 0x388   :  { %3102 = vst [vmem:[#allocation3] sm:$0xff] %v3101_v63 }
 0x389   :  { %3957 = shalt.err (!%p3954_p4)
}
 0x38a   :  { %3112 = dma.vmem_to_hbm [thread:$0]  %s3110_s12, 128, %s4937_s5, [#allocation4]  }
 0x38b   :  { %3966 = dma.done.wait [#allocation4], 128  }
 0x38c   :  { %3967 = vsyncadd [#allocation4], 4294967168 }
 0x38d   :  { %3116 = vsyncpa [#allocation4], 1 }

</bundles_post_ra>
